<compile_context>
chip_gen: v5e
topology: v5e:2x2
jax: 0.10.0
libtpu: 0.0.40
codegen_flags: <defaults>
</compile_context>

<pallas_src>
import functools
import math

import numpy as np
import jax
import jax.numpy as jnp
from jax.experimental import pallas as pl
from jax.experimental.pallas import tpu as pltpu

_SQRT_2 = math.sqrt(2.0)
_LN_EPS = 1e-5


def _gelu_exact(x):
    # torch.nn.GELU default (erf form).  tanh-approx would move work onto the idle
    # EUP slot but changes numerics slightly vs. the PyTorch module.
    return 0.5 * x * (1.0 + jax.lax.erf(x * (1.0 / _SQRT_2)))


# ---------------------------------------------------------------------------
# fused decoder kernel: one grid step == one batch element
# ---------------------------------------------------------------------------
def _decoder_kernel(*refs, layer_cfgs, C0, T0):
    """refs = (x, lin_w, lin_b, [wflat, conv_b, ln_g, ln_b, proj_w, proj_b, up]*L, out).

    Everything below is a plain 2-D (channels, time) op; batch is handled by the grid,
    so nothing in the body unrolls or masks over B.
    """
    x_ref, lin_w_ref, lin_b_ref = refs[0], refs[1], refs[2]
    out_ref = refs[-1]
    layer_refs = refs[3:-1]

    # latent -> feature map: Linear, then channel-major (C0, T0) relayout.
    h = jnp.dot(x_ref[0], lin_w_ref[...],
                preferred_element_type=jnp.float32) + lin_b_ref[...]      # (1, C0*T0)
    # (1, C0*T0) -> (C0, T0): built from C0 static row slices (a lane-splitting
    # reshape is not reliably lowerable by Mosaic; the batch grid already removed
    # the xB factor this relayout used to carry).
    a = jnp.concatenate([h[:, c * T0:(c + 1) * T0] for c in range(C0)], axis=0)

    T = T0
    for li, (cin, cout, K, dil, t_out) in enumerate(layer_cfgs):
        wf_ref, cb_ref, g_ref, be_ref, pw_ref, pb_ref, up_ref = \
            layer_refs[7 * li:7 * (li + 1)]
        pad = dil * (K - 1) // 2          # 'same' padding (odd kernel_size only)

        # im2col over the K dilated taps, stacked to (K*cin, T) so the whole dilated
        # conv is ONE MXU contraction; 'same' zero padding is done in-register.
        if pad > 0:
            zpad = jnp.zeros((cin, pad), jnp.float32)
            ap = jnp.concatenate([zpad, a, zpad], axis=1)                 # (cin, T+2p)
        else:
            ap = a
        xs = jnp.concatenate([ap[:, k * dil:k * dil + T] for k in range(K)],
                             axis=0)                                      # (K*cin, T)

        # dilated 'same' Conv1d + bias (one matmul)
        y = jnp.dot(wf_ref[...], xs,
                    preferred_element_type=jnp.float32) + cb_ref[...]     # (cout, T)

        # LayerNorm over the time axis + affine + exact GELU (lane-vectorized)
        mean = jnp.mean(y, axis=-1, keepdims=True)
        var = jnp.mean((y - mean) ** 2, axis=-1, keepdims=True)
        yn = (y - mean) * jax.lax.rsqrt(var + _LN_EPS)
        yn = yn * g_ref[...] + be_ref[...]
        act = _gelu_exact(yn)

        # skip path: 1x1 Conv1d channel projection of the layer input
        skip = jnp.dot(pw_ref[...], a,
                       preferred_element_type=jnp.float32) + pb_ref[...]  # (cout, T)

        # nn.Upsample(nearest) == one (T, t_out) 0/1 matmul (no batch block-diagonal)
        a = jnp.dot(act + skip, up_ref[...],
                    preferred_element_type=jnp.float32)                   # (cout, t_out)
        T = t_out

    out_ref[0] = a.astype(out_ref.dtype)


# ---------------------------------------------------------------------------
# wrapper: one-time weight flattening + one pallas_call with a batch grid
# ---------------------------------------------------------------------------
def _nearest_upsample_matrix(t_in, t_out):
    # PyTorch nn.Upsample(mode='nearest'): src = floor(dst * t_in / t_out)
    idx = (np.arange(t_out) * t_in) // t_out
    u = np.zeros((t_in, t_out), np.float32)
    u[idx, np.arange(t_out)] = 1.0
    return u


def _round_up(n, m):
    return ((n + m - 1) // m) * m


def make_fused_decoder(params):
    """Pre-flattens weights once; returned forward(x) is exactly one pallas_call."""
    C0, T0 = params["c0"], params["t0"]
    H = C0 * T0
    latent = int(params["lin_w"].shape[0])

    flat_inputs = [params["lin_w"], params["lin_b"].reshape(1, H)]
    layer_cfgs = []
    T = T0
    for lp in params["layers"]:
        cout, cin, K = lp["conv_w"].shape
        assert K % 2 == 1, "padding='same' mapping implemented for odd kernel_size only"
        dil, t_out = int(lp["dilation"]), int(lp["t_out"])
        # wflat[o, k*cin + c] == conv_w[o, c, k] (matches in-kernel tap stacking order)
        wflat = jnp.transpose(lp["conv_w"], (0, 2, 1)).reshape(cout, K * cin)
        flat_inputs += [
            wflat,
            lp["conv_b"].reshape(cout, 1),
            lp["ln_w"].reshape(1, T),
            lp["ln_b"].reshape(1, T),
            lp["proj_w"],
            lp["proj_b"].reshape(cout, 1),
            jnp.asarray(_nearest_upsample_matrix(T, t_out)),
        ]
        layer_cfgs.append((cin, cout, K, dil, t_out))
        T = t_out
    c_last, t_last = layer_cfgs[-1][1], T
    flat_inputs = [jnp.asarray(v, jnp.float32) for v in flat_inputs]

    # Explicit scoped-VMEM budget: (8,128)-tile padded resident constants, doubled for
    # pipeline buffering, plus margin for activations; clamped to [32 MiB, 64 MiB].
    resident = sum(_round_up(v.shape[0], 8) * _round_up(v.shape[1], 128) * 4
                   for v in flat_inputs)
    vmem_bytes = int(min(max(2 * resident + (8 << 20), 32 << 20), 64 << 20))

    kern = functools.partial(_decoder_kernel, layer_cfgs=tuple(layer_cfgs),
                             C0=C0, T0=T0)
    # Full-array blocks with constant index maps: weights are DMA'd into VMEM once
    # and revisited across the whole batch grid (no per-step re-copies).
    weight_specs = [pl.BlockSpec(v.shape, lambda b: (0, 0)) for v in flat_inputs]

    def forward(x):
        B = int(x.shape[0])
        assert x.shape == (B, latent), f"expected (*, {latent}) latent input, got {x.shape}"
        x3 = x.astype(jnp.float32).reshape(B, 1, latent)
        call = pl.pallas_call(
            kern,
            grid=(B,),
            out_shape=jax.ShapeDtypeStruct((B, c_last, t_last), jnp.float32),
            in_specs=[pl.BlockSpec((1, 1, latent), lambda b: (b, 0, 0))]
                     + weight_specs,
            out_specs=pl.BlockSpec((1, c_last, t_last), lambda b: (b, 0, 0)),
            compiler_params=pltpu.CompilerParams(
                dimension_semantics=("parallel",),
                vmem_limit_bytes=vmem_bytes),
        )
        return call(x3, *flat_inputs)

    return forward


# ---------------------------------------------------------------------------
# deterministic synthetic parameters
# ---------------------------------------------------------------------------
def init_skip_decoder_params(key, latent_dim, channels, timesteps, kernel_size=3):
    channels = tuple(channels)[::-1]                   # decoder reverses encoder lists
    timesteps = tuple(timesteps)[::-1]
    num_layers = len(timesteps) - 1

    params = {}
    key, kw, kb = jax.random.split(key, 3)
    h = channels[0] * timesteps[0]
    params["lin_w"] = 0.1 * jax.random.normal(kw, (latent_dim, h), jnp.float32)
    params["lin_b"] = 0.1 * jax.random.normal(kb, (h,), jnp.float32)
    params["c0"], params["t0"] = channels[0], timesteps[0]

    layers = []
    for i in range(num_layers):
        cin, cout, t = channels[i], channels[i + 1], timesteps[i]
        key, k1, k2, k3, k4 = jax.random.split(key, 5)
        layers.append(dict(
            conv_w=0.1 * jax.random.normal(k1, (cout, cin, kernel_size), jnp.float32),
            conv_b=0.1 * jax.random.normal(k2, (cout,), jnp.float32),
            ln_w=jnp.ones((t,), jnp.float32),
            ln_b=jnp.zeros((t,), jnp.float32),
            proj_w=0.1 * jax.random.normal(k3, (cout, cin), jnp.float32),
            proj_b=0.1 * jax.random.normal(k4, (cout,), jnp.float32),
            dilation=i + 1,
            t_out=timesteps[i + 1],
        ))
    params["layers"] = layers
    return params


# pure-JAX reference (same math) for a tight correctness check
def _reference_forward(params, x):
    B = x.shape[0]
    h = x @ params["lin_w"] + params["lin_b"]
    a = h.reshape(B, params["c0"], params["t0"])
    for lp in params["layers"]:
        cout, cin, K = lp["conv_w"].shape
        d = int(lp["dilation"])
        pad = d * (K - 1) // 2
        T = a.shape[-1]
        ap = jnp.pad(a, ((0, 0), (0, 0), (pad, pad)))
        y = jnp.zeros((B, cout, T), jnp.float32)
        for k in range(K):
            y = y + jnp.einsum("oc,bct->bot", lp["conv_w"][:, :, k],
                               ap[:, :, k * d:k * d + T])
        y = y + lp["conv_b"][None, :, None]
        mean = y.mean(-1, keepdims=True)
        var = ((y - mean) ** 2).mean(-1, keepdims=True)
        yn = (y - mean) * jax.lax.rsqrt(var + _LN_EPS)
        yn = yn * lp["ln_w"] + lp["ln_b"]
        act = 0.5 * yn * (1.0 + jax.lax.erf(yn / _SQRT_2))
        skip = jnp.einsum("oc,bct->bot", lp["proj_w"], a) + lp["proj_b"][None, :, None]
        z = act + skip
        idx = (jnp.arange(lp["t_out"]) * T) // lp["t_out"]
        a = jnp.take(z, idx, axis=-1)
    return a


if __name__ == "__main__":
    # True-f32 matmuls on both the Pallas and reference paths so the check can be tight.
    jax.config.update("jax_default_matmul_precision", "float32")

    latent_dim = 32
    channels = (4, 16, 8)     # encoder order; decoder sees (8, 16, 4)
    timesteps = (16, 8, 4)    # encoder order; decoder sees (4, 8, 16)
    batch = 2

    key = jax.random.PRNGKey(0)
    key, xk = jax.random.split(key)
    x = jax.random.normal(xk, (batch, latent_dim), jnp.float32)

    params = init_skip_decoder_params(key, latent_dim, channels, timesteps,
                                      kernel_size=3)
    forward = make_fused_decoder(params)

    out = jax.block_until_ready(forward(x))
    assert out.shape == (batch, channels[0], timesteps[0]), out.shape
    assert bool(jnp.all(jnp.isfinite(out)))

    ref = jax.block_until_ready(_reference_forward(params, x))
    max_err = float(jnp.max(jnp.abs(out - ref)))
    assert max_err < 1e-4, f"mismatch vs reference: max_err={max_err}"

    print("KERNEL_OK")
</pallas_src>

<mosaic_0001>
module attributes {stable_mosaic.version = 11 : i64} {
  func.func @_decoder_kernel(%arg0: i32, %arg1: memref<1x1x32xf32, #tpu.memory_space<vmem>>, %arg2: memref<32x32xf32, #tpu.memory_space<vmem>>, %arg3: memref<1x32xf32, #tpu.memory_space<vmem>>, %arg4: memref<16x24xf32, #tpu.memory_space<vmem>>, %arg5: memref<16x1xf32, #tpu.memory_space<vmem>>, %arg6: memref<1x4xf32, #tpu.memory_space<vmem>>, %arg7: memref<1x4xf32, #tpu.memory_space<vmem>>, %arg8: memref<16x8xf32, #tpu.memory_space<vmem>>, %arg9: memref<16x1xf32, #tpu.memory_space<vmem>>, %arg10: memref<4x8xf32, #tpu.memory_space<vmem>>, %arg11: memref<4x48xf32, #tpu.memory_space<vmem>>, %arg12: memref<4x1xf32, #tpu.memory_space<vmem>>, %arg13: memref<1x8xf32, #tpu.memory_space<vmem>>, %arg14: memref<1x8xf32, #tpu.memory_space<vmem>>, %arg15: memref<4x16xf32, #tpu.memory_space<vmem>>, %arg16: memref<4x1xf32, #tpu.memory_space<vmem>>, %arg17: memref<8x16xf32, #tpu.memory_space<vmem>>, %arg18: memref<1x4x16xf32, #tpu.memory_space<vmem>>) attributes {dimension_semantics = [#tpu.dimension_semantics<parallel>], iteration_bounds = array<i64: 2>, scalar_prefetch = 0 : i64, scratch_operands = 0 : i64, tpu.core_type = #tpu.core_type<tc>, window_params = [{transform_indices = @transform_0, window_bounds = array<i64: 1, 1, 32>}, {pipeline_mode = #tpu.pipeline_mode<synchronous>, transform_indices = @transform_1, window_bounds = array<i64: 32, 32>}, {pipeline_mode = #tpu.pipeline_mode<synchronous>, transform_indices = @transform_2, window_bounds = array<i64: 1, 32>}, {pipeline_mode = #tpu.pipeline_mode<synchronous>, transform_indices = @transform_3, window_bounds = array<i64: 16, 24>}, {pipeline_mode = #tpu.pipeline_mode<synchronous>, transform_indices = @transform_4, window_bounds = array<i64: 16, 1>}, {pipeline_mode = #tpu.pipeline_mode<synchronous>, transform_indices = @transform_5, window_bounds = array<i64: 1, 4>}, {pipeline_mode = #tpu.pipeline_mode<synchronous>, transform_indices = @transform_6, window_bounds = array<i64: 1, 4>}, {pipeline_mode = #tpu.pipeline_mode<synchronous>, transform_indices = @transform_7, window_bounds = array<i64: 16, 8>}, {pipeline_mode = #tpu.pipeline_mode<synchronous>, transform_indices = @transform_8, window_bounds = array<i64: 16, 1>}, {pipeline_mode = #tpu.pipeline_mode<synchronous>, transform_indices = @transform_9, window_bounds = array<i64: 4, 8>}, {pipeline_mode = #tpu.pipeline_mode<synchronous>, transform_indices = @transform_10, window_bounds = array<i64: 4, 48>}, {pipeline_mode = #tpu.pipeline_mode<synchronous>, transform_indices = @transform_11, window_bounds = array<i64: 4, 1>}, {pipeline_mode = #tpu.pipeline_mode<synchronous>, transform_indices = @transform_12, window_bounds = array<i64: 1, 8>}, {pipeline_mode = #tpu.pipeline_mode<synchronous>, transform_indices = @transform_13, window_bounds = array<i64: 1, 8>}, {pipeline_mode = #tpu.pipeline_mode<synchronous>, transform_indices = @transform_14, window_bounds = array<i64: 4, 16>}, {pipeline_mode = #tpu.pipeline_mode<synchronous>, transform_indices = @transform_15, window_bounds = array<i64: 4, 1>}, {pipeline_mode = #tpu.pipeline_mode<synchronous>, transform_indices = @transform_16, window_bounds = array<i64: 8, 16>}, {transform_indices = @transform_17, window_bounds = array<i64: 1, 4, 16>}]} {
    %c0 = arith.constant 0 : index
    %c0_0 = arith.constant 0 : index
    %c0_1 = arith.constant 0 : index
    %0 = vector.load %arg1[%c0, %c0_0, %c0_1] : memref<1x1x32xf32, #tpu.memory_space<vmem>>, vector<1x1x32xf32>
    %1 = vector.shape_cast %0 : vector<1x1x32xf32> to vector<1x32xf32>
    %c0_2 = arith.constant 0 : index
    %c0_3 = arith.constant 0 : index
    %2 = vector.load %arg2[%c0_2, %c0_3] : memref<32x32xf32, #tpu.memory_space<vmem>>, vector<32x32xf32>
    %cst = arith.constant dense<0.000000e+00> : vector<1x32xf32>
    %3 = tpu.matmul %1, %2, %cst {dimension_numbers = #tpu.dot_dimension_numbers<[1], [0], [0], [1], [0, 0, 1, 1], [], []>, precision = #tpu.contract_precision<fp32>} : vector<1x32xf32>, vector<32x32xf32>, vector<1x32xf32> -> vector<1x32xf32>
    %c0_4 = arith.constant 0 : index
    %c0_5 = arith.constant 0 : index
    %4 = vector.load %arg3[%c0_4, %c0_5] : memref<1x32xf32, #tpu.memory_space<vmem>>, vector<1x32xf32>
    %5 = arith.addf %3, %4 : vector<1x32xf32>
    %6 = vector.extract_strided_slice %5 {offsets = [0, 0], sizes = [1, 4], strides = [1, 1]} : vector<1x32xf32> to vector<1x4xf32>
    %7 = vector.extract_strided_slice %5 {offsets = [0, 4], sizes = [1, 4], strides = [1, 1]} : vector<1x32xf32> to vector<1x4xf32>
    %8 = vector.extract_strided_slice %5 {offsets = [0, 8], sizes = [1, 4], strides = [1, 1]} : vector<1x32xf32> to vector<1x4xf32>
    %9 = vector.extract_strided_slice %5 {offsets = [0, 12], sizes = [1, 4], strides = [1, 1]} : vector<1x32xf32> to vector<1x4xf32>
    %10 = vector.extract_strided_slice %5 {offsets = [0, 16], sizes = [1, 4], strides = [1, 1]} : vector<1x32xf32> to vector<1x4xf32>
    %11 = vector.extract_strided_slice %5 {offsets = [0, 20], sizes = [1, 4], strides = [1, 1]} : vector<1x32xf32> to vector<1x4xf32>
    %12 = vector.extract_strided_slice %5 {offsets = [0, 24], sizes = [1, 4], strides = [1, 1]} : vector<1x32xf32> to vector<1x4xf32>
    %13 = vector.extract_strided_slice %5 {offsets = [0, 28], sizes = [1, 4], strides = [1, 1]} : vector<1x32xf32> to vector<1x4xf32>
    %14 = tpu.concatenate %6, %7, %8, %9, %10, %11, %12, %13 in 0 : vector<1x4xf32>, vector<1x4xf32>, vector<1x4xf32>, vector<1x4xf32>, vector<1x4xf32>, vector<1x4xf32>, vector<1x4xf32>, vector<1x4xf32> -> vector<8x4xf32>
    %cst_6 = arith.constant 0.000000e+00 : f32
    %15 = vector.broadcast %cst_6 : f32 to vector<8x1xf32>
    %16 = tpu.concatenate %15, %14, %15 in 1 : vector<8x1xf32>, vector<8x4xf32>, vector<8x1xf32> -> vector<8x6xf32>
    %17 = vector.extract_strided_slice %16 {offsets = [0, 0], sizes = [8, 4], strides = [1, 1]} : vector<8x6xf32> to vector<8x4xf32>
    %18 = vector.extract_strided_slice %16 {offsets = [0, 1], sizes = [8, 4], strides = [1, 1]} : vector<8x6xf32> to vector<8x4xf32>
    %19 = vector.extract_strided_slice %16 {offsets = [0, 2], sizes = [8, 4], strides = [1, 1]} : vector<8x6xf32> to vector<8x4xf32>
    %20 = tpu.concatenate %17, %18, %19 in 0 : vector<8x4xf32>, vector<8x4xf32>, vector<8x4xf32> -> vector<24x4xf32>
    %c0_7 = arith.constant 0 : index
    %c0_8 = arith.constant 0 : index
    %21 = vector.load %arg4[%c0_7, %c0_8] : memref<16x24xf32, #tpu.memory_space<vmem>>, vector<16x24xf32>
    %cst_9 = arith.constant dense<0.000000e+00> : vector<16x4xf32>
    %22 = tpu.matmul %21, %20, %cst_9 {dimension_numbers = #tpu.dot_dimension_numbers<[1], [0], [0], [1], [0, 0, 1, 1], [], []>, precision = #tpu.contract_precision<fp32>} : vector<16x24xf32>, vector<24x4xf32>, vector<16x4xf32> -> vector<16x4xf32>
    %c0_10 = arith.constant 0 : index
    %c0_11 = arith.constant 0 : index
    %23 = vector.load %arg5[%c0_10, %c0_11] : memref<16x1xf32, #tpu.memory_space<vmem>>, vector<16x1xf32>
    %24 = vector.broadcast %23 : vector<16x1xf32> to vector<16x4xf32>
    %25 = arith.addf %22, %24 : vector<16x4xf32>
    %cst_12 = arith.constant dense<0.000000e+00> : vector<16xf32>
    %26 = vector.multi_reduction <add>, %25, %cst_12 [1] : vector<16x4xf32> to vector<16xf32>
    %27 = vector.shape_cast %26 : vector<16xf32> to vector<16x1xf32>
    %cst_13 = arith.constant 4.000000e+00 : f32
    %28 = vector.broadcast %cst_13 : f32 to vector<16x1xf32>
    %29 = arith.divf %27, %28 : vector<16x1xf32>
    %30 = vector.broadcast %29 : vector<16x1xf32> to vector<16x4xf32>
    %31 = arith.subf %25, %30 : vector<16x4xf32>
    %32 = arith.mulf %31, %31 : vector<16x4xf32>
    %cst_14 = arith.constant dense<0.000000e+00> : vector<16xf32>
    %33 = vector.multi_reduction <add>, %32, %cst_14 [1] : vector<16x4xf32> to vector<16xf32>
    %34 = vector.shape_cast %33 : vector<16xf32> to vector<16x1xf32>
    %cst_15 = arith.constant 4.000000e+00 : f32
    %35 = vector.broadcast %cst_15 : f32 to vector<16x1xf32>
    %36 = arith.divf %34, %35 : vector<16x1xf32>
    %37 = vector.broadcast %29 : vector<16x1xf32> to vector<16x4xf32>
    %38 = arith.subf %25, %37 : vector<16x4xf32>
    %cst_16 = arith.constant 9.99999974E-6 : f32
    %39 = vector.broadcast %cst_16 : f32 to vector<16x1xf32>
    %40 = arith.addf %36, %39 : vector<16x1xf32>
    %41 = math.rsqrt %40 : vector<16x1xf32>
    %42 = vector.broadcast %41 : vector<16x1xf32> to vector<16x4xf32>
    %43 = arith.mulf %38, %42 : vector<16x4xf32>
    %c0_17 = arith.constant 0 : index
    %c0_18 = arith.constant 0 : index
    %44 = vector.load %arg6[%c0_17, %c0_18] : memref<1x4xf32, #tpu.memory_space<vmem>>, vector<1x4xf32>
    %45 = vector.broadcast %44 : vector<1x4xf32> to vector<16x4xf32>
    %46 = arith.mulf %43, %45 : vector<16x4xf32>
    %c0_19 = arith.constant 0 : index
    %c0_20 = arith.constant 0 : index
    %47 = vector.load %arg7[%c0_19, %c0_20] : memref<1x4xf32, #tpu.memory_space<vmem>>, vector<1x4xf32>
    %48 = vector.broadcast %47 : vector<1x4xf32> to vector<16x4xf32>
    %49 = arith.addf %46, %48 : vector<16x4xf32>
    %cst_21 = arith.constant 5.000000e-01 : f32
    %50 = vector.broadcast %cst_21 : f32 to vector<16x4xf32>
    %51 = arith.mulf %50, %49 : vector<16x4xf32>
    %cst_22 = arith.constant 0.707106769 : f32
    %52 = vector.broadcast %cst_22 : f32 to vector<16x4xf32>
    %53 = arith.mulf %49, %52 : vector<16x4xf32>
    %54 = math.erf %53 : vector<16x4xf32>
    %cst_23 = arith.constant 1.000000e+00 : f32
    %55 = vector.broadcast %cst_23 : f32 to vector<16x4xf32>
    %56 = arith.addf %55, %54 : vector<16x4xf32>
    %57 = arith.mulf %51, %56 : vector<16x4xf32>
    %c0_24 = arith.constant 0 : index
    %c0_25 = arith.constant 0 : index
    %58 = vector.load %arg8[%c0_24, %c0_25] : memref<16x8xf32, #tpu.memory_space<vmem>>, vector<16x8xf32>
    %cst_26 = arith.constant dense<0.000000e+00> : vector<16x4xf32>
    %59 = tpu.matmul %58, %14, %cst_26 {dimension_numbers = #tpu.dot_dimension_numbers<[1], [0], [0], [1], [0, 0, 1, 1], [], []>, precision = #tpu.contract_precision<fp32>} : vector<16x8xf32>, vector<8x4xf32>, vector<16x4xf32> -> vector<16x4xf32>
    %c0_27 = arith.constant 0 : index
    %c0_28 = arith.constant 0 : index
    %60 = vector.load %arg9[%c0_27, %c0_28] : memref<16x1xf32, #tpu.memory_space<vmem>>, vector<16x1xf32>
    %61 = vector.broadcast %60 : vector<16x1xf32> to vector<16x4xf32>
    %62 = arith.addf %59, %61 : vector<16x4xf32>
    %63 = arith.addf %57, %62 : vector<16x4xf32>
    %c0_29 = arith.constant 0 : index
    %c0_30 = arith.constant 0 : index
    %64 = vector.load %arg10[%c0_29, %c0_30] : memref<4x8xf32, #tpu.memory_space<vmem>>, vector<4x8xf32>
    %cst_31 = arith.constant dense<0.000000e+00> : vector<16x8xf32>
    %65 = tpu.matmul %63, %64, %cst_31 {dimension_numbers = #tpu.dot_dimension_numbers<[1], [0], [0], [1], [0, 0, 1, 1], [], []>, precision = #tpu.contract_precision<fp32>} : vector<16x4xf32>, vector<4x8xf32>, vector<16x8xf32> -> vector<16x8xf32>
    %cst_32 = arith.constant 0.000000e+00 : f32
    %66 = vector.broadcast %cst_32 : f32 to vector<16x2xf32>
    %67 = tpu.concatenate %66, %65, %66 in 1 : vector<16x2xf32>, vector<16x8xf32>, vector<16x2xf32> -> vector<16x12xf32>
    %68 = vector.extract_strided_slice %67 {offsets = [0, 0], sizes = [16, 8], strides = [1, 1]} : vector<16x12xf32> to vector<16x8xf32>
    %69 = vector.extract_strided_slice %67 {offsets = [0, 2], sizes = [16, 8], strides = [1, 1]} : vector<16x12xf32> to vector<16x8xf32>
    %70 = vector.extract_strided_slice %67 {offsets = [0, 4], sizes = [16, 8], strides = [1, 1]} : vector<16x12xf32> to vector<16x8xf32>
    %71 = tpu.concatenate %68, %69, %70 in 0 : vector<16x8xf32>, vector<16x8xf32>, vector<16x8xf32> -> vector<48x8xf32>
    %c0_33 = arith.constant 0 : index
    %c0_34 = arith.constant 0 : index
    %72 = vector.load %arg11[%c0_33, %c0_34] : memref<4x48xf32, #tpu.memory_space<vmem>>, vector<4x48xf32>
    %cst_35 = arith.constant dense<0.000000e+00> : vector<4x8xf32>
    %73 = tpu.matmul %72, %71, %cst_35 {dimension_numbers = #tpu.dot_dimension_numbers<[1], [0], [0], [1], [0, 0, 1, 1], [], []>, precision = #tpu.contract_precision<fp32>} : vector<4x48xf32>, vector<48x8xf32>, vector<4x8xf32> -> vector<4x8xf32>
    %c0_36 = arith.constant 0 : index
    %c0_37 = arith.constant 0 : index
    %74 = vector.load %arg12[%c0_36, %c0_37] : memref<4x1xf32, #tpu.memory_space<vmem>>, vector<4x1xf32>
    %75 = vector.broadcast %74 : vector<4x1xf32> to vector<4x8xf32>
    %76 = arith.addf %73, %75 : vector<4x8xf32>
    %cst_38 = arith.constant dense<0.000000e+00> : vector<4xf32>
    %77 = vector.multi_reduction <add>, %76, %cst_38 [1] : vector<4x8xf32> to vector<4xf32>
    %78 = vector.shape_cast %77 : vector<4xf32> to vector<4x1xf32>
    %cst_39 = arith.constant 8.000000e+00 : f32
    %79 = vector.broadcast %cst_39 : f32 to vector<4x1xf32>
    %80 = arith.divf %78, %79 : vector<4x1xf32>
    %81 = vector.broadcast %80 : vector<4x1xf32> to vector<4x8xf32>
    %82 = arith.subf %76, %81 : vector<4x8xf32>
    %83 = arith.mulf %82, %82 : vector<4x8xf32>
    %cst_40 = arith.constant dense<0.000000e+00> : vector<4xf32>
    %84 = vector.multi_reduction <add>, %83, %cst_40 [1] : vector<4x8xf32> to vector<4xf32>
    %85 = vector.shape_cast %84 : vector<4xf32> to vector<4x1xf32>
    %cst_41 = arith.constant 8.000000e+00 : f32
    %86 = vector.broadcast %cst_41 : f32 to vector<4x1xf32>
    %87 = arith.divf %85, %86 : vector<4x1xf32>
    %88 = vector.broadcast %80 : vector<4x1xf32> to vector<4x8xf32>
    %89 = arith.subf %76, %88 : vector<4x8xf32>
    %cst_42 = arith.constant 9.99999974E-6 : f32
    %90 = vector.broadcast %cst_42 : f32 to vector<4x1xf32>
    %91 = arith.addf %87, %90 : vector<4x1xf32>
    %92 = math.rsqrt %91 : vector<4x1xf32>
    %93 = vector.broadcast %92 : vector<4x1xf32> to vector<4x8xf32>
    %94 = arith.mulf %89, %93 : vector<4x8xf32>
    %c0_43 = arith.constant 0 : index
    %c0_44 = arith.constant 0 : index
    %95 = vector.load %arg13[%c0_43, %c0_44] : memref<1x8xf32, #tpu.memory_space<vmem>>, vector<1x8xf32>
    %96 = vector.broadcast %95 : vector<1x8xf32> to vector<4x8xf32>
    %97 = arith.mulf %94, %96 : vector<4x8xf32>
    %c0_45 = arith.constant 0 : index
    %c0_46 = arith.constant 0 : index
    %98 = vector.load %arg14[%c0_45, %c0_46] : memref<1x8xf32, #tpu.memory_space<vmem>>, vector<1x8xf32>
    %99 = vector.broadcast %98 : vector<1x8xf32> to vector<4x8xf32>
    %100 = arith.addf %97, %99 : vector<4x8xf32>
    %cst_47 = arith.constant 5.000000e-01 : f32
    %101 = vector.broadcast %cst_47 : f32 to vector<4x8xf32>
    %102 = arith.mulf %101, %100 : vector<4x8xf32>
    %cst_48 = arith.constant 0.707106769 : f32
    %103 = vector.broadcast %cst_48 : f32 to vector<4x8xf32>
    %104 = arith.mulf %100, %103 : vector<4x8xf32>
    %105 = math.erf %104 : vector<4x8xf32>
    %cst_49 = arith.constant 1.000000e+00 : f32
    %106 = vector.broadcast %cst_49 : f32 to vector<4x8xf32>
    %107 = arith.addf %106, %105 : vector<4x8xf32>
    %108 = arith.mulf %102, %107 : vector<4x8xf32>
    %c0_50 = arith.constant 0 : index
    %c0_51 = arith.constant 0 : index
    %109 = vector.load %arg15[%c0_50, %c0_51] : memref<4x16xf32, #tpu.memory_space<vmem>>, vector<4x16xf32>
    %cst_52 = arith.constant dense<0.000000e+00> : vector<4x8xf32>
    %110 = tpu.matmul %109, %65, %cst_52 {dimension_numbers = #tpu.dot_dimension_numbers<[1], [0], [0], [1], [0, 0, 1, 1], [], []>, precision = #tpu.contract_precision<fp32>} : vector<4x16xf32>, vector<16x8xf32>, vector<4x8xf32> -> vector<4x8xf32>
    %c0_53 = arith.constant 0 : index
    %c0_54 = arith.constant 0 : index
    %111 = vector.load %arg16[%c0_53, %c0_54] : memref<4x1xf32, #tpu.memory_space<vmem>>, vector<4x1xf32>
    %112 = vector.broadcast %111 : vector<4x1xf32> to vector<4x8xf32>
    %113 = arith.addf %110, %112 : vector<4x8xf32>
    %114 = arith.addf %108, %113 : vector<4x8xf32>
    %c0_55 = arith.constant 0 : index
    %c0_56 = arith.constant 0 : index
    %115 = vector.load %arg17[%c0_55, %c0_56] : memref<8x16xf32, #tpu.memory_space<vmem>>, vector<8x16xf32>
    %cst_57 = arith.constant dense<0.000000e+00> : vector<4x16xf32>
    %116 = tpu.matmul %114, %115, %cst_57 {dimension_numbers = #tpu.dot_dimension_numbers<[1], [0], [0], [1], [0, 0, 1, 1], [], []>, precision = #tpu.contract_precision<fp32>} : vector<4x8xf32>, vector<8x16xf32>, vector<4x16xf32> -> vector<4x16xf32>
    %c0_58 = arith.constant 0 : index
    %c0_59 = arith.constant 0 : index
    %c0_60 = arith.constant 0 : index
    %117 = vector.load %arg18[%c0_58, %c0_59, %c0_60] : memref<1x4x16xf32, #tpu.memory_space<vmem>>, vector<1x4x16xf32>
    %118 = vector.shape_cast %117 : vector<1x4x16xf32> to vector<4x16xf32>
    %119 = vector.shape_cast %116 : vector<4x16xf32> to vector<1x4x16xf32>
    tpu.vector_store %arg18[%c0_58, %c0_59, %c0_60], %119 {strides = array<i32>} : memref<1x4x16xf32, #tpu.memory_space<vmem>>, vector<1x4x16xf32>,
    return
  }
  func.func @transform_0(%arg0: i32) -> (i32, i32, i32) {
    %c0_i32 = arith.constant 0 : i32
    %c0_i32_0 = arith.constant 0 : i32
    %c0_i32_1 = arith.constant 0 : i32
    return %arg0, %c0_i32, %c0_i32_0 : i32, i32, i32
  }
  func.func @transform_1(%arg0: i32) -> (i32, i32) {
    %c0_i32 = arith.constant 0 : i32
    %c0_i32_0 = arith.constant 0 : i32
    %c0_i32_1 = arith.constant 0 : i32
    return %c0_i32, %c0_i32_0 : i32, i32
  }
  func.func @transform_2(%arg0: i32) -> (i32, i32) {
    %c0_i32 = arith.constant 0 : i32
    %c0_i32_0 = arith.constant 0 : i32
    %c0_i32_1 = arith.constant 0 : i32
    return %c0_i32, %c0_i32_0 : i32, i32
  }
  func.func @transform_3(%arg0: i32) -> (i32, i32) {
    %c0_i32 = arith.constant 0 : i32
    %c0_i32_0 = arith.constant 0 : i32
    %c0_i32_1 = arith.constant 0 : i32
    return %c0_i32, %c0_i32_0 : i32, i32
  }
  func.func @transform_4(%arg0: i32) -> (i32, i32) {
    %c0_i32 = arith.constant 0 : i32
    %c0_i32_0 = arith.constant 0 : i32
    %c0_i32_1 = arith.constant 0 : i32
    return %c0_i32, %c0_i32_0 : i32, i32
  }
  func.func @transform_5(%arg0: i32) -> (i32, i32) {
    %c0_i32 = arith.constant 0 : i32
    %c0_i32_0 = arith.constant 0 : i32
    %c0_i32_1 = arith.constant 0 : i32
    return %c0_i32, %c0_i32_0 : i32, i32
  }
  func.func @transform_6(%arg0: i32) -> (i32, i32) {
    %c0_i32 = arith.constant 0 : i32
    %c0_i32_0 = arith.constant 0 : i32
    %c0_i32_1 = arith.constant 0 : i32
    return %c0_i32, %c0_i32_0 : i32, i32
  }
  func.func @transform_7(%arg0: i32) -> (i32, i32) {
    %c0_i32 = arith.constant 0 : i32
    %c0_i32_0 = arith.constant 0 : i32
    %c0_i32_1 = arith.constant 0 : i32
    return %c0_i32, %c0_i32_0 : i32, i32
  }
  func.func @transform_8(%arg0: i32) -> (i32, i32) {
    %c0_i32 = arith.constant 0 : i32
    %c0_i32_0 = arith.constant 0 : i32
    %c0_i32_1 = arith.constant 0 : i32
    return %c0_i32, %c0_i32_0 : i32, i32
  }
  func.func @transform_9(%arg0: i32) -> (i32, i32) {
    %c0_i32 = arith.constant 0 : i32
    %c0_i32_0 = arith.constant 0 : i32
    %c0_i32_1 = arith.constant 0 : i32
    return %c0_i32, %c0_i32_0 : i32, i32
  }
  func.func @transform_10(%arg0: i32) -> (i32, i32) {
    %c0_i32 = arith.constant 0 : i32
    %c0_i32_0 = arith.constant 0 : i32
    %c0_i32_1 = arith.constant 0 : i32
    return %c0_i32, %c0_i32_0 : i32, i32
  }
  func.func @transform_11(%arg0: i32) -> (i32, i32) {
    %c0_i32 = arith.constant 0 : i32
    %c0_i32_0 = arith.constant 0 : i32
    %c0_i32_1 = arith.constant 0 : i32
    return %c0_i32, %c0_i32_0 : i32, i32
  }
  func.func @transform_12(%arg0: i32) -> (i32, i32) {
    %c0_i32 = arith.constant 0 : i32
    %c0_i32_0 = arith.constant 0 : i32
    %c0_i32_1 = arith.constant 0 : i32
    return %c0_i32, %c0_i32_0 : i32, i32
  }
  func.func @transform_13(%arg0: i32) -> (i32, i32) {
    %c0_i32 = arith.constant 0 : i32
    %c0_i32_0 = arith.constant 0 : i32
    %c0_i32_1 = arith.constant 0 : i32
    return %c0_i32, %c0_i32_0 : i32, i32
  }
  func.func @transform_14(%arg0: i32) -> (i32, i32) {
    %c0_i32 = arith.constant 0 : i32
    %c0_i32_0 = arith.constant 0 : i32
    %c0_i32_1 = arith.constant 0 : i32
    return %c0_i32, %c0_i32_0 : i32, i32
  }
  func.func @transform_15(%arg0: i32) -> (i32, i32) {
    %c0_i32 = arith.constant 0 : i32
    %c0_i32_0 = arith.constant 0 : i32
    %c0_i32_1 = arith.constant 0 : i32
    return %c0_i32, %c0_i32_0 : i32, i32
  }
  func.func @transform_16(%arg0: i32) -> (i32, i32) {
    %c0_i32 = arith.constant 0 : i32
    %c0_i32_0 = arith.constant 0 : i32
    %c0_i32_1 = arith.constant 0 : i32
    return %c0_i32, %c0_i32_0 : i32, i32
  }
  func.func @transform_17(%arg0: i32) -> (i32, i32, i32) {
    %c0_i32 = arith.constant 0 : i32
    %c0_i32_0 = arith.constant 0 : i32
    %c0_i32_1 = arith.constant 0 : i32
    return %arg0, %c0_i32, %c0_i32_0 : i32, i32, i32
  }
}

</mosaic_0001>

<bundles_post_ra>
// kernel: tpu_custom_call.1
= control target key start
LH: loop header
LB: loop body
LE: loop exit
PB: predicated region body
PF: predicated region fallthrough
CT: control target
= control target key end

     0   :  { %s3276_s0 = inlined_call_operand.hbm [shape: f32[2,1,32], index: 0, kind: input, shape index: {}]   ;;  %s3277_s1 = inlined_call_operand.vmem [shape: f32[32,32], index: 1, kind: input, shape index: {}]   ;;  %s3278_s2 = inlined_call_operand.vmem [shape: f32[1,32], index: 2, kind: input, shape index: {}]   ;;  %s3279_s3 = inlined_call_operand.vmem [shape: f32[16,24], index: 3, kind: input, shape index: {}]   ;;  %s3280_s4 = inlined_call_operand.vmem [shape: f32[16,1], index: 4, kind: input, shape index: {}]   ;;  %s3281_s5 = inlined_call_operand.hbm [shape: f32[1,4], index: 5, kind: input, shape index: {}]   ;;  %s3282_s6 = inlined_call_operand.hbm [shape: f32[1,4], index: 6, kind: input, shape index: {}]   ;;  %s3283_s7 = inlined_call_operand.vmem [shape: f32[16,8], index: 7, kind: input, shape index: {}]   ;;  %s3284_s8 = inlined_call_operand.vmem [shape: f32[16,1], index: 8, kind: input, shape index: {}]   ;;  %s3285_s9 = inlined_call_operand.vmem [shape: f32[4,8], index: 9, kind: input, shape index: {}]   ;;  %s3286_s10 = inlined_call_operand.vmem [shape: f32[4,48], index: 10, kind: input, shape index: {}]   ;;  %s3287_s11 = inlined_call_operand.vmem [shape: f32[4,1], index: 11, kind: input, shape index: {}]   ;;  %s3288_s12 = inlined_call_operand.hbm [shape: f32[1,8], index: 12, kind: input, shape index: {}]   ;;  %s3289_s13 = inlined_call_operand.hbm [shape: f32[1,8], index: 13, kind: input, shape index: {}]   ;;  %s3290_s14 = inlined_call_operand.vmem [shape: f32[4,16], index: 14, kind: input, shape index: {}]   ;;  %s3291_s15 = inlined_call_operand.vmem [shape: f32[4,1], index: 15, kind: input, shape index: {}]   ;;  %s3292_s16 = inlined_call_operand.vmem [shape: f32[8,16], index: 16, kind: input, shape index: {}]   ;;  %s3293_s17 = inlined_call_operand.hbm [shape: f32[2,4,16], index: 17, kind: output, shape index: {}]  }
   0x1   :  { %3301 = sst [smem:[#allocation20_spill]] %s3276_s0 }
   0x2   :  { %3302 = sst [smem:[#allocation21_spill]] %s3277_s1 }
   0x3   :  { %3303 = sst [smem:[#allocation22_spill]] %s3281_s5 }
   0x4   :  { %3304 = sst [smem:[#allocation23_spill]] %s3282_s6 }
   0x5   :  { %3305 = sst [smem:[#allocation24_spill]] %s3288_s12 }
   0x6   :  { %3306 = sst [smem:[#allocation25_spill]] %s3289_s13 }
   0x7   :  { %3307 = sst [smem:[#allocation26_spill]] %s3293_s17 }
   0x8   :  { %22 = vsyncpa [#allocation3], 0 }
   0x9   :  { %24 = vsyncpa [#allocation3 + $0x1], 0 }
   0xa   :  { %25 = vsyncpa [#allocation6], 0 }
   0xb   :  { %26 = vsyncpa [#allocation9], 0 }
   0xc   :  { %27 = vsyncpa [#allocation4], 0 }
   0xd   :  { %29 = vsyncpa [#allocation4 + $0x1], 0  ;;  %s2891_s24 = smov 0   ;;  %s2893_s25 = smov 0  }
   0xe   :  { %s2895_s26 = smov 0   ;;  %s2897_s27 = smov 0  }
   0xf LB: > { %3308 = sst [smem:[#allocation16_spill]] %s2769_s24  ;;  %s2915_s30 = sadd.s32 4294967295, %s2781_s27   ;;  %s2781_s27 = sphi %s2897_s27, %s3329_s27   ;;  %s2777_s26 = sphi %s2895_s26, %s3334_s26   ;;  %s2773_s25 = sphi %s2893_s25, %s3333_s25   ;;  %s2769_s24 = sphi %s2891_s24, %s3332_s24  }
  0x10   : > { %3309 = sst [smem:[#allocation17_spill]] %s2777_s26  ;;  %p2414_p0 = scmp.ge.s32.totalorder %s2781_s27, 1 }
  0x11   : > { %s3310_s5 = sld [smem:[#allocation22_spill]]  ;;  %p56_p1 = scmp.eq.s32.totalorder %s2915_s30, 0 }
  0x12   : > { %p428_p2 = scmp.lt.s32.totalorder %s2781_s27, 3  ;;  %s2783_s19 = smov [#allocation5]  }
  0x13   : > { %s454_s1 = sshll.u32 %s2783_s19, 4  ;;  %s3312_s12 = sld [smem:[#allocation24_spill]]  ;;  %s455_s1 = int_to_ptr.vmem [resolvable:$true] %s454_s1 }
  0x14   : > { %p2920_p3 = pnand %p2414_p0, %p428_p2  ;;  %s2784_s28 = smov [#allocation8]  }
  0x15   : > { %s493_s29 = sshll.u32 %s2784_s28, 4  ;;  %s3314_s6 = sld [smem:[#allocation23_spill]]  ;;  %s494_s29 = int_to_ptr.vmem [resolvable:$true] %s493_s29 }
  0x16   : > { %p2453_p5 = pneg %p2920_p3  ;;  %s3315_s13 = sld [smem:[#allocation25_spill]] }
  0x17   : > { %s452_s0 = sshll.u32 %s3310_s5, 4  ;;  %s2785_s17 = smov [#allocation7]   ;;  %s453_s0 = int_to_ptr.hbm [resolvable:$true] %s452_s0 }
  0x18   : > { %p2932_p6 = pnand %p2453_p5, %p56_p1  ;;  %s466_s5 = sshll.u32 %s2785_s17, 4  ;;  %s467_s5 = int_to_ptr.vmem [resolvable:$true] %s466_s5 }
  0x19   : > { %s491_s22 = sshll.u32 %s3312_s12, 4  ;;  %s2413_s12 = sadd.s32 4294967294, %s2781_s27   ;;  %s492_s22 = int_to_ptr.hbm [resolvable:$true] %s491_s22 }
  0x1a   : > { %2456 = dma.hbm_to_vmem [thread:$0]  (!%p2932_p6), %s453_s0, 16, %s455_s1, [#allocation6]  }
  0x1b   : > { %s464_s20 = sshll.u32 %s3314_s6, 4  ;;  %s2786_s0 = smov [#allocation10]   ;;  %s465_s20 = int_to_ptr.hbm [resolvable:$true] %s464_s20 }
  0x1c   : > { %2462 = dma.hbm_to_vmem [thread:$0]  (!%p2932_p6), %s492_s22, 16, %s494_s29, [#allocation9]  }
  0x1d   : > { %s503_s28 = sshll.u32 %s3315_s13, 4  ;;  %s505_s1 = sshll.u32 %s2786_s0, 4  ;;  %s504_s28 = int_to_ptr.hbm [resolvable:$true] %s503_s28  ;;  %s506_s1 = int_to_ptr.vmem [resolvable:$true] %s505_s1 }
  0x1e   : > { %2459 = dma.hbm_to_vmem [thread:$0]  (!%p2932_p6), %s465_s20, 16, %s467_s5, [#allocation6]  }
  0x1f   : > { %2465 = dma.hbm_to_vmem [thread:$0]  (!%p2932_p6), %s504_s28, 16, %s506_s1, [#allocation9]  }
  0x20   : > { %s2952_s22 = sadd.s32 1, %s2781_s27   ;;  %s42_s29 = sadd.s32 1, %s2777_s26 }
  0x21   : > { %3316 = sst [smem:[#allocation18_spill]] %s2952_s22  ;;  %s39_s17 = ssub.s32 %s2781_s27, %s2952_s22 }
  0x22   : > { %p40_p7 = scmp.eq.s32.totalorder %s39_s17, 0  ;;  %p49_p8 = scmp.ne.s32.totalorder %s2777_s26, %s2773_s25 }
  0x23   : > { %p50_p9 = scmp.eq.s32.totalorder %s2781_s27, 0  ;;  %p55_p10 = scmp.ne.s32.totalorder %s2773_s25, %s2769_s24 }
  0x24   : > { %s2963_s19 = scalar_select %p40_p7, %s2777_s26, %s42_s29  }
  0x25   : > { %p2965_p11 = por %p50_p9, %p49_p8  ;;  %p2971_p12 = por %p56_p1, %p55_p10 }
  0x26   : > { %3317 = sst [smem:[#allocation19_spill]] %s2963_s19  ;;  %p415_p13 = scmp.eq.s32.totalorder %s2915_s30, 1 }
  0x27   : > { %p421_p0 = scmp.eq.s32.totalorder %s2413_s12, 1  ;;  %p2478_p2 = scmp.lt.s32.totalorder %s2781_s27, 2 }
  0x28   : > { %s525_s21 = sand.u32 1, %s2777_s26   ;;  %p2978_p5 = por %p415_p13, %p49_p8 }
  0x29   : > { %p2982_p6 = por %p421_p0, %p55_p10  ;;  %s3322_s17 = sld [smem:[#allocation20_spill]] }
  0x2a   : > { %s528_s6 = scalar_lea.vmem [#allocation2], %s525_s21  ;;  %p2992_p7 = pnand %p2478_p2, %p2965_p11 }
  0x2b   : > { %s535_s13 = sshll.u32 %s528_s6, 4  ;;  %s526_s26 = scalar_lea.sflag [#allocation3], %s525_s21  ;;  %s536_s13 = int_to_ptr.vmem [resolvable:$true] %s535_s13 }
  0x2c   : > { %p2681_p9 = pneg %p2992_p7 }
  0x2f   : > { %s531_s29 = scalar_lea.hbm %s3322_s17, %s2781_s27  ;;  %s2684_s1 = scalar_lea.hbm %s3322_s17, 2 }
  0x30   : > { %s533_s19 = sshll.u32 %s531_s29, 4  ;;  %s534_s19 = int_to_ptr.hbm [resolvable:$true] %s533_s19 }
  0x31   : > { %s2677_s22 = sshra.s32 %s534_s19, 4  ;;  %s2678_s22 = int_to_ptr.hbm [resolvable:$true] %s2677_s22 }
  0x32   : > { %s2679_s24 = scalar_lea.hbm %s2678_s22, 1  ;;  %p2685_p11 = scmp.lt.s32.totalorder %s2678_s22, %s3322_s17 }
  0x33   : > { %p2680_p8 = scmp.ne.s32.totalorder %s2678_s22, %s2679_s24  ;;  %p2686_p0 = scmp.lt.s32.totalorder %s2684_s1, %s2679_s24 }
  0x35   : > { %p2682_p10 = pnand %p2681_p9, %p2680_p8  ;;  %p2687_p2 = por %p2686_p0, %p2685_p11 }
  0x37   : > { %p2683_p13 = pneg %p2682_p10 }
  0x39   : > { %p2688_p4 = pnand %p2687_p2, %p2683_p13 }
  0x3b   : > { %2691 = shalt.err (!%p2688_p4)
}
  0x3c   : > { %2469 = dma.hbm_to_vmem [thread:$0]  (!%p2992_p7), %s534_s19, 16, %s536_s13, %s526_s26  }
  0x3d   : > { %544 = sbr.rel (%p2920_p3) target bundleno = 2112 (0x840), region = 88  ;;  %s3009_s21 = sand.u32 (!%p2920_p3), 1, %s2773_s25  }
  0x3e   : > { %s547_s0 = scalar_lea.sflag (!%p2920_p3), [#allocation3], %s3009_s21  ;;  %s549_s6 = scalar_lea.vmem (!%p2920_p3), [#allocation2], %s3009_s21 }
  0x42   : > { %2752 = dma.done.wait (%p2971_p12), %s547_s0, 16  }
  0x43   : > { %2754 = vsyncadd (%p2971_p12), %s547_s0, 4294967280 }
  0x44   : > { %2756 = dma.done.wait (%p56_p1), [#allocation6], 32  }
  0x45   : > { %2758 = vsyncadd (%p56_p1), [#allocation6], 4294967264 }
  0x46   : > { %2760 = dma.done.wait (%p56_p1), [#allocation9], 32  }
  0x47   : > { %2762 = vsyncadd (%p56_p1), [#allocation9], 4294967264  ;;  %vm626_vm0 = vcmask 261120   ;;  %s3324_s26 = sld [smem:[#allocation21_spill]]  ;;  %v620_v7 = vld [vmem:[%s549_s6] sm:$0x1] }
  0x48   : > { %v628_v9 = vsel %vm626_vm0, %v620_v7, 0  ;;  %v625_v31 = vld [vmem:[%s3278_s2] sm:$0x1]  ;;  %s2787_s6 = smov 108   ;;  %s2788_s13 = smov 116   ;;  %vm844_vm1 = vcmask 1040384  }
  0x49   : > { %v650_v13 = vand.u32 4294901760, %v628_v9  ;;  %s2789_s24 = smov 124   ;;  %s2791_s22 = smov 112   ;;  %vm846_vm2 = vcmask 1041408   ;;  %vm848_vm3 = vcmask 1042432   ;;  %vm850_vm4 = vcmask 1043456  }
  0x4a   : > { %s2792_s19 = smov 120   ;;  %s2793_s23 = smov 100   ;;  %vm852_vm5 = vcmask 1044480   ;;  %vm854_vm6 = vcmask 1045504   ;;  %vm856_vm7 = vcmask 1046528   ;;  %vm862_vm8 = vcmask 7168  }
  0x4b   : > { %v651_v17 = vsub.f32 %v628_v9, %v650_v13  ;;  %s2794_s12 = smov 1   ;;  %vm864_vm9 = vcmask 39936   ;;  %s2795_s1 = smov 127   ;;  %v873_v7 = vld [vmem:[%s3279_s3] sm:$0xff]  ;;  %vm887_vm10 = vcmask 195584   ;;  %vm1263_vm11 = vcmask 64512  }
  0x4c   : > { %s2796_s29 = smov 126   ;;  %vm1097_vm12 = vcmask 31744   ;;  %s3326_s0 = sld [smem:[#allocation26_spill]] }
  0x4d   : > { %s3325_s18 = smov %s3324_s26  ;;  %v624_v0 = vld [vmem:[%s3324_s26 + $0x18] sm:$0xff]  ;;  %v652_v23 = vand.u32 4294901760, %v651_v17  ;;  %s2790_s26 = smov 104  }
  0x4e   : > { %v623_v1 = vld [vmem:[%s3325_s18 + $0x10] sm:$0xff]  ;;  %v622_v2 = vld [vmem:[%s3325_s18 + $0x8] sm:$0xff]  ;;  %v642_v3 = vand.u32 4294901760, %v624_v0  ;;  %v621_v6 = vld [vmem:[%s3325_s18] sm:$0xff] }
  0x4f   : > { %v644_v4 = vand.u32 4294901760, %v623_v1  ;;  %v646_v5 = vand.u32 4294901760, %v622_v2  ;;  %v648_v8 = vand.u32 4294901760, %v621_v6  ;;  %v653_v26 = vsub.f32 %v651_v17, %v652_v23 }
  0x50   : > { %v672_v10 = vsub.f32 %v624_v0, %v642_v3  ;;  %643 = vmatpush.msra.mxu0 %v642_v3  ;;  %743 = vmatpush.msra.mxu3 %v642_v3 }
  0x51   : > { %v678_v11 = vsub.f32 %v623_v1, %v644_v4  ;;  %v684_v12 = vsub.f32 %v622_v2, %v646_v5  ;;  %v690_v14 = vsub.f32 %v621_v6, %v648_v8  ;;  %v654_v29 = vand.u32 4294901760, %v653_v26 }
  0x52   : > { %714 = vmatpush.msra.mxu2 %v672_v10  ;;  %645 = vmatpush.msra.mxu0 %v644_v4  ;;  %v673_v15 = vand.u32 4294901760, %v672_v10 }
  0x53   : > { %v679_v16 = vand.u32 4294901760, %v678_v11  ;;  %v685_v18 = vand.u32 4294901760, %v684_v12  ;;  %745 = vmatpush.msra.mxu3 %v644_v4  ;;  %v691_v19 = vand.u32 4294901760, %v690_v14 }
  0x54   : > { %717 = vmatpush.msra.mxu2 %v678_v11  ;;  %v674_v20 = vsub.f32 %v672_v10, %v673_v15  ;;  %647 = vmatpush.msra.mxu0 %v646_v5  ;;  %v889_v10 = vsel %vm887_vm10, %v873_v7, 0 }
  0x55   : > { %v680_v21 = vsub.f32 %v678_v11, %v679_v16  ;;  %v686_v22 = vsub.f32 %v684_v12, %v685_v18  ;;  %747 = vmatpush.msra.mxu3 %v646_v5  ;;  %v692_v27 = vsub.f32 %v690_v14, %v691_v19 }
  0x56   : > { %v675_v24 = vand.u32 4294901760, %v674_v20  ;;  %720 = vmatpush.msra.mxu2 %v684_v12  ;;  %649 = vmatpush.msra.mxu0 %v648_v8  ;;  %v3051_v12 = vand.u32 4294901760, %v889_v10 }
  0x57   : > { %v681_v25 = vand.u32 4294901760, %v680_v21  ;;  %749 = vmatpush.msra.mxu3 %v648_v8  ;;  %v687_v28 = vand.u32 4294901760, %v686_v22  ;;  %655 = vmatmul.f32.vlgmr.msra.gmra.mxu0 %v654_v29  ;;  %v693_v30 = vand.u32 4294901760, %v692_v27 }
  0x58   : > { %772 = vmatpush.msrb.mxu0 %v673_v15  ;;  %676 = vmatpush.msra.mxu1 %v675_v24  ;;  %v914_v15 = vsub.f32 %v889_v10, %v3051_v12 }
  0x59   : > { %723 = vmatpush.msra.mxu2 %v690_v14  ;;  %753 = vmatmul.f32.vlgmr.msra.gmra.mxu3 %v652_v23 }
  0x5a   : > { %726 = vmatmul.f32.vlgmr.msra.gmra.mxu2 %v651_v17  ;;  %682 = vmatpush.msra.mxu1 %v681_v25  ;;  %v875_v17 = vld [vmem:[%s3280_s4] sm:$0xff]  ;;  %v915_v20 = vand.u32 4294901760, %v914_v15 }
  0x5b   : > { %776 = vmatpush.msrb.mxu0 %v679_v16 }
  0x5c   : > { %688 = vmatpush.msra.mxu1 %v687_v28  ;;  %v916_v24 = vsub.f32 %v914_v15, %v915_v20 }
  0x5d   : > { %780 = vmatpush.msrb.mxu0 %v685_v18  ;;  %v2797_v18 = vmov 0  }
  0x5e   : > { %694 = vmatpush.msra.mxu1 %v693_v30  ;;  %2534 = vset.pattern.permute.xlu1 %v2797_v18  ;;  %v917_v30 = vand.u32 4294901760, %v916_v24 }
  0x5f   : > { %696 = vmatmul.f32.vlgmr.msra.gmra.mxu1 %v650_v13  ;;  %784 = vmatpush.msrb.mxu0 %v691_v19 }
  0x60   : > { %803 = vmatpush.msrb.mxu1 %v642_v3  ;;  %786 = vmatmul.f32.vlgmr.msrb.gmra.mxu0 %v650_v13 }
  0x61   : > { %2535 = vset.pattern.permute.xlu2 %v2797_v18  ;;  %2536 = vset.pattern.permute.xlu0 %v2797_v18 }
  0x62   : > { %805 = vmatpush.msrb.mxu1 %v644_v4 }
  0x64   : > { %807 = vmatpush.msrb.mxu1 %v646_v5 }
  0x66   : > { %809 = vmatpush.msrb.mxu1 %v648_v8 }
  0x67   : > { %811 = vmatmul.f32.vlgmr.msrb.gmra.mxu1 %v650_v13  ;;  %v874_v13 = vld [vmem:[%s3279_s3 + $0x8] sm:$0xff] }
  0x68   : > { %v892_v16 = vsel %vm887_vm10, %v874_v13, 0 }
  0x69   : > { %v921_v21 = vand.u32 4294901760, %v892_v16 }
  0x6b   : > { %v922_v25 = vsub.f32 %v892_v16, %v921_v21 }
  0xd4   : > { %v656_v32 = vpop.f32.mrf.mxu0 }
  0xd5   : > { %v657_v33 = vadd.f32 %v656_v32, %v625_v31  ;;  %v923_v31 = vand.u32 4294901760, %v922_v25 }
  0xdc   : > { %v697_v34 = vpop.f32.mrf.mxu1  ;;  %v754_v37 = vpop.f32.mrf.mxu3 }
  0xdd   : > { %v727_v35 = vpop.f32.mrf.mxu2  ;;  %v698_v36 = vadd.f32 %v697_v34, %v657_v33  ;;  %v787_v39 = vpop.f32.mrf.mxu0 }
  0xdf   : > { %v728_v38 = vadd.f32 %v727_v35, %v698_v36  ;;  %v924_v36 = vsub.f32 %v922_v25, %v923_v31 }
  0xe1   : > { %v755_v40 = vadd.f32 %v754_v37, %v728_v38  ;;  %v876_v38 = vld [vmem:[%s3280_s4 + $0x8] sm:$0xff] }
  0xe3   : > { %v788_v41 = vadd.f32 %v787_v39, %v755_v40 }
  0xe4   : > { %v812_v42 = vpop.f32.mrf.mxu1 }
  0xe5   : > { %v813_v43 = vadd.f32 %v812_v42, %v788_v41  ;;  %v925_v41 = vand.u32 4294901760, %v924_v36 }
  0xe7   : > { %v832_v44 = vrot.slane %v813_v43, 3  ;;  %v824_v45 = vrot.slane %v813_v43, 5  ;;  %v816_v46 = vrot.slane %v813_v43, 7  ;;  %v836_v47 = vrot.slane %v813_v43, 2 }
  0xe8   : > { %v828_v48 = vrot.slane %v813_v43, 4  ;;  %v820_v49 = vrot.slane %v813_v43, 6  ;;  %v840_v50 = vrot.slane %v813_v43, 1 }
  0xe9   : > { %833 = vrot.lane.b32.xlu2 %v832_v44, %s2787_s6  ;;  %825 = vrot.lane.b32.xlu1 %v824_v45, %s2788_s13 }
  0xea   : > { %817 = vrot.lane.b32.xlu0 %v816_v46, %s2789_s24 }
  0xf1   : > { %837 = vrot.lane.b32.xlu2 %v836_v47, %s2790_s26  ;;  %829 = vrot.lane.b32.xlu1 %v828_v48, %s2791_s22 }
  0xf2   : > { %821 = vrot.lane.b32.xlu0 %v820_v49, %s2792_s19 }
  0xfa   : > { %841 = vrot.lane.b32.xlu0 %v840_v50, %s2793_s23  ;;  %v1250_v50 = vld [vmem:[%s3283_s7 + $0x8] sm:$0xff]  ;;  %s2425_s23 = sshll.u32 %s3009_s21, 2 }
 0x143   : > { %v834_v53 = vpop.permute.xlu2 %833 }
 0x14b   : > { %v838_v61 = vpop.permute.xlu2 %837 }
 0x15b   : > { %v826_v51 = vpop.permute.xlu1 %825 }
 0x15c   : > { %v818_v52 = vpop.permute.xlu0 %817 }
 0x15d   : > { %v845_v54 = vsel %vm844_vm1, %v813_v43, %v818_v52  ;;  %v1249_v43 = vld [vmem:[%s3283_s7] sm:$0xff] }
 0x15e   : > { %v1265_v44 = vsel %vm1263_vm11, %v1249_v43, 0 }
 0x15f   : > { %v1287_v45 = vand.u32 4294901760, %v1265_v44 }
 0x161   : > { %v1288_v46 = vsub.f32 %v1265_v44, %v1287_v45 }
 0x163   : > { %v830_v57 = vpop.permute.xlu1 %829  ;;  %v1289_v47 = vand.u32 4294901760, %v1288_v46 }
 0x164   : > { %v822_v55 = vpop.permute.xlu0 %821 }
 0x165   : > { %v847_v56 = vsel %vm846_vm2, %v845_v54, %v822_v55  ;;  %v1290_v49 = vsub.f32 %v1288_v46, %v1289_v47 }
 0x166   : > { %v849_v58 = vsel %vm848_vm3, %v847_v56, %v826_v51  ;;  %v1268_v51 = vsel %vm1263_vm11, %v1250_v50, 0 }
 0x167   : > { %v851_v59 = vsel %vm850_vm4, %v849_v58, %v830_v57  ;;  %v1291_v52 = vand.u32 4294901760, %v1290_v49 }
 0x168   : > { %v853_v60 = vsel %vm852_vm5, %v851_v59, %v834_v53  ;;  %v1295_v53 = vand.u32 4294901760, %v1268_v51 }
 0x169   : > { %v855_v63 = vsel %vm854_vm6, %v853_v60, %v838_v61 }
 0x16a   : > { %v1296_v54 = vsub.f32 %v1268_v51, %v1295_v53 }
 0x16c   : > { %v842_v62 = vpop.permute.xlu0 %841  ;;  %v1297_v56 = vand.u32 4294901760, %v1296_v54 }
 0x16d   : > { %v857_v0 = vsel %vm856_vm7, %v855_v63, %v842_v62 }
 0x16e   : > { %859 = vrot.lane.b32.xlu1 %v857_v0, %s2794_s12  ;;  %v1285_v14 = vand.u32 4294901760, %v857_v0  ;;  %v1298_v59 = vsub.f32 %v1296_v54, %v1297_v56  ;;  %s2799_s12 = smov 2  }
 0x170   : > { %v1320_v19 = vsub.f32 %v857_v0, %v1285_v14  ;;  %v1299_v61 = vand.u32 4294901760, %v1298_v59 }
 0x172   : > { %v1321_v23 = vand.u32 4294901760, %v1320_v19 }
 0x174   : > { %v1322_v29 = vsub.f32 %v1320_v19, %v1321_v23 }
 0x176   : > { %879 = vperm.xlu1 %2534, %v875_v17   ;;  %v1323_v34 = vand.u32 4294901760, %v1322_v29 }
 0x1e0   : > { %v860_v1 = vpop.permute.xlu1 %859 }
 0x1e1   : > { %v863_v2 = vsel %vm862_vm8, 0.0, %v860_v1 }
 0x1e2   : > { %v865_v3 = vsel %vm864_vm9, %v863_v2, 0.0 }
 0x1e3   : > { %867 = vrot.lane.b32.xlu0 %v865_v3, %s2795_s1  ;;  %870 = vrot.lane.b32.xlu2 %v865_v3, %s2796_s29  ;;  %v911_v22 = vand.u32 4294901760, %v865_v3 }
 0x1e5   : > { %v956_v27 = vsub.f32 %v865_v3, %v911_v22 }
 0x1e7   : > { %v957_v33 = vand.u32 4294901760, %v956_v27 }
 0x1e8   : > { %v880_v55 = vpop.permute.xlu1 %879 }
 0x1e9   : > { %v958_v39 = vsub.f32 %v956_v27, %v957_v33 }
 0x1eb   : > { %884 = vperm.xlu2 %2535, %v876_v38   ;;  %v959_v42 = vand.u32 4294901760, %v958_v39 }
 0x23d   : > { %v871_v4 = vpop.permute.xlu2 %870 }
 0x23e   : > { %v3043_v5 = vand.u32 4294901760, %v871_v4 }
 0x240   : > { %v944_v6 = vsub.f32 %v871_v4, %v3043_v5  ;;  %908 = vmatpush.msrb.mxu2 %v3043_v5  ;;  %1017 = vmatpush.msra.mxu1 %v3043_v5 }
 0x242   : > { %985 = vmatpush.msra.mxu0 %v944_v6  ;;  %v945_v8 = vand.u32 4294901760, %v944_v6 }
 0x244   : > { %v946_v9 = vsub.f32 %v944_v6, %v945_v8 }
 0x245   : > { %v885_v0 = vpop.permute.xlu2 %884 }
 0x246   : > { %v947_v11 = vand.u32 4294901760, %v946_v9 }
 0x248   : > { %948 = vmatpush.msrb.mxu3 %v947_v11 }
 0x255   : > { %v868_v26 = vpop.permute.xlu0 %867 }
 0x256   : > { %v909_v28 = vand.u32 4294901760, %v868_v26 }
 0x258   : > { %v950_v32 = vsub.f32 %v868_v26, %v909_v28  ;;  %910 = vmatpush.msrb.mxu2 %v909_v28  ;;  %1019 = vmatpush.msra.mxu1 %v909_v28 }
 0x25a   : > { %912 = vmatpush.msrb.mxu2 %v911_v22  ;;  %988 = vmatpush.msra.mxu0 %v950_v32  ;;  %v951_v35 = vand.u32 4294901760, %v950_v32 }
 0x25b   : > { %1021 = vmatpush.msra.mxu1 %v911_v22  ;;  %918 = vmatmul.f32.vlgmr.msrb.gmra.mxu2 %v917_v30 }
 0x25c   : > { %1051 = vmatpush.msra.mxu2 %v945_v8  ;;  %v952_v37 = vsub.f32 %v950_v32, %v951_v35  ;;  %991 = vmatpush.msra.mxu0 %v956_v27 }
 0x25d   : > { %1324 = vmatpush.msrb.mxu1 %v1323_v34  ;;  %994 = vmatmul.f32.vlgmr.msra.gmra.mxu0 %v914_v15 }
 0x25e   : > { %1025 = vmatmul.f32.vlgmr.msra.gmra.mxu1 %v915_v20  ;;  %1055 = vmatpush.msra.mxu2 %v951_v35  ;;  %v953_v40 = vand.u32 4294901760, %v952_v37  ;;  %v1251_v37 = vld [vmem:[%s3284_s8] sm:$0xff] }
 0x25f   : > { %1437 = vmatpush.msra.mxu1 %v1285_v14  ;;  %1286 = vmatpush.msrb.mxu0 %v1285_v14 }
 0x260   : > { %1059 = vmatpush.msra.mxu2 %v957_v33  ;;  %954 = vmatpush.msrb.mxu3 %v953_v40 }
 0x261   : > { %1411 = vmatpush.msra.mxu0 %v1321_v23 }
 0x262   : > { %1351 = vmatpush.msrb.mxu2 %v1320_v19  ;;  %960 = vmatpush.msrb.mxu3 %v959_v42 }
 0x263   : > { %926 = vmatmul.f32.gmra.mxu2 %v925_v41  ;;  %962 = vmatmul.f32.vlgmr.msrb.gmra.mxu3 %v3051_v12 }
 0x264   : > { %1083 = vmatpush.msra.mxu3 %v3043_v5 }
 0x265   : > { %999 = vmatmul.f32.gmra.mxu0 %v922_v25 }
 0x266   : > { %1031 = vmatmul.f32.gmra.mxu1 %v923_v31  ;;  %1085 = vmatpush.msra.mxu3 %v909_v28 }
 0x268   : > { %1087 = vmatpush.msra.mxu3 %v911_v22  ;;  %v2798_v22 = vmov 4.0  }
 0x269   : > { %2541 = vrcp.f32 %v2798_v22 }
 0x26a   : > { %1379 = vmatpush.msrb.mxu3 %v1285_v14 }
 0x26b   : > { %1061 = vmatmul.f32.vlgmr.msra.gmra.mxu2 %v3051_v12  ;;  %966 = vmatmul.f32.gmra.mxu3 %v921_v21 }
 0x26d   : > { %1292 = vmatmul.f32.vlgmr.msrb.gmra.mxu0 %v1291_v52 }
 0x26e   : > { %1326 = vmatmul.f32.vlgmr.msrb.gmra.mxu1 %v1287_v45 }
 0x26f   : > { %v2542_v23 = vpop.eup %2541 }
 0x270   : > { %v1105_v24 = vmul.f32 4.0, %v2542_v23  ;;  %vm1109_vm13 = vweird.f32 %v2542_v23 }
 0x272   : > { %v1106_v25 = vsub.f32 1.0, %v1105_v24 }
 0x273   : > { %1065 = vmatmul.f32.gmra.mxu2 %v921_v21  ;;  %1089 = vmatmul.f32.vlgmr.msra.gmra.mxu3 %v3051_v12 }
 0x274   : > { %v1107_v26 = vmul.f32 %v2542_v23, %v1106_v25 }
 0x275   : > { %1300 = vmatmul.f32.gmra.mxu0 %v1299_v61  ;;  %v2537_v61 = vld [vmem:[#allocation5] ss:$0 sm:$0xff] }
 0x276   : > { %1330 = vmatmul.f32.gmra.mxu1 %v1295_v53  ;;  %v1108_v27 = vadd.f32 %v2542_v23, %v1107_v26 }
 0x278   : > { %v1110_v28 = vsel %vm1109_vm13, %v2542_v23, %v1108_v27 }
 0x27b   : > { %1093 = vmatmul.f32.gmra.mxu3 %v921_v21  ;;  %1354 = vmatmul.f32.vlgmr.msrb.gmra.mxu2 %v1288_v46  ;;  %v1252_v21 = vld [vmem:[%s3284_s8 + $0x8] sm:$0xff] }
 0x27d   : > { %1413 = vmatmul.f32.vlgmr.msra.gmra.mxu0 %v1287_v45 }
 0x27e   : > { %1439 = vmatmul.f32.vlgmr.msra.gmra.mxu1 %v1287_v45  ;;  %v1449_v45 = vld [vmem:[%s3285_s9] sm:$0xf] }
 0x27f   : > { %v1457_v46 = vsel %vm850_vm4, %v1449_v45, 0 }
 0x280   : > { %v1474_v49 = vand.u32 4294901760, %v1457_v46 }
 0x282   : > { %1475 = vmatpush.msra.mxu2 %v1474_v49  ;;  %v1509_v51 = vsub.f32 %v1457_v46, %v1474_v49  ;;  %1568 = vmatpush.msrb.mxu1 %v1474_v49 }
 0x283   : > { %1383 = vmatmul.f32.vlgmr.msrb.gmra.mxu3 %v1289_v47  ;;  %1359 = vmatmul.f32.gmra.mxu2 %v1296_v54 }
 0x284   : > { %1540 = vmatpush.msrb.mxu0 %v1509_v51 }
 0x285   : > { %1417 = vmatmul.f32.gmra.mxu0 %v1295_v53 }
 0x286   : > { %1443 = vmatmul.f32.gmra.mxu1 %v1295_v53  ;;  %v1510_v53 = vand.u32 4294901760, %v1509_v51 }
 0x288   : > { %1600 = vmatpush.msrb.mxu2 %v1510_v53 }
 0x28b   : > { %1389 = vmatmul.f32.gmra.mxu3 %v1297_v56 }
 0x2da   : > { %v995_v62 = vpop.f32.mrf.mxu0 }
 0x2db   : > { %v1026_v1 = vpop.f32.mrf.mxu1 }
 0x2de   : > { %v919_v48 = vpop.f32.mrf.mxu2 }
 0x2df   : > { %v920_v60 = vadd.f32 %v919_v48, %v880_v55  ;;  %v1511_v55 = vsub.f32 %v1509_v51, %v1510_v53 }
 0x2e2   : > { %v1000_v8 = vpop.f32.mrf.mxu0 }
 0x2e3   : > { %v1032_v13 = vpop.f32.mrf.mxu1 }
 0x2e6   : > { %v927_v57 = vpop.f32.mrf.mxu2  ;;  %v963_v58 = vpop.f32.mrf.mxu3 }
 0x2e7   : > { %v964_v63 = vadd.f32 %v963_v58, %v920_v60  ;;  %v928_v4 = vadd.f32 %v927_v57, %v885_v0  ;;  %v1512_v58 = vand.u32 4294901760, %v1511_v55  ;;  %v2538_v0 = vld [vmem:[#allocation7] ss:$0 sm:$0xff] }
 0x2e9   : > { %v996_v3 = vadd.f32 %v995_v62, %v964_v63  ;;  %1513 = vmatpush.msra.mxu3 %v1512_v58 }
 0x2eb   : > { %v1027_v6 = vadd.f32 %v1026_v1, %v996_v3  ;;  %1626 = vmatpush.msrb.mxu3 %v1474_v49 }
 0x2ee   : > { %v967_v2 = vpop.f32.mrf.mxu3  ;;  %v1062_v5 = vpop.f32.mrf.mxu2 }
 0x2ef   : > { %v968_v7 = vadd.f32 %v967_v2, %v928_v4  ;;  %v1063_v9 = vadd.f32 %v1062_v5, %v1027_v6 }
 0x2f1   : > { %v1001_v11 = vadd.f32 %v1000_v8, %v968_v7 }
 0x2f3   : > { %v1033_v16 = vadd.f32 %v1032_v13, %v1001_v11 }
 0x2f6   : > { %v1090_v10 = vpop.f32.mrf.mxu3  ;;  %v1066_v15 = vpop.f32.mrf.mxu2 }
 0x2f7   : > { %v1091_v12 = vadd.f32 %v1090_v10, %v1063_v9  ;;  %v1067_v17 = vadd.f32 %v1066_v15, %v1033_v16 }
 0x2f9   : > { %v1098_v14 = vsel %vm1097_vm12, %v1091_v12, 0.0 }
 0x2fa   : > { %1099 = vadd.xlane.f32.xlu0 %v1098_v14 }
 0x2fe   : > { %v1094_v18 = vpop.f32.mrf.mxu3 }
 0x2ff   : > { %v1095_v19 = vadd.f32 %v1094_v18, %v1067_v17 }
 0x301   : > { %v1101_v20 = vsel %vm1097_vm12, %v1095_v19, 0.0 }
 0x302   : > { %1102 = vadd.xlane.f32.xlu1 %v1101_v20 }
 0x30e   : > { %1255 = vperm.xlu0 %2536, %v1251_v37  }
 0x31b   : > { %1260 = vperm.xlu1 %2534, %v1252_v21  }
 0x36d   : > { %v1100_v29 = vpop.xlane.xlu0 %1099 }
 0x36e   : > { %v1111_v30 = vmul.f32 %v1110_v28, %v1100_v29 }
 0x370   : > { %v1113_v31 = vsub.f32 %v1091_v12, %v1111_v30 }
 0x372   : > { %v1115_v32 = vmul.f32 %v1113_v31, %v1113_v31 }
 0x374   : > { %v1117_v33 = vsel %vm1097_vm12, %v1115_v32, 0.0 }
 0x375   : > { %1118 = vadd.xlane.f32.xlu2 %v1117_v33  ;;  %v1103_v34 = vpop.xlane.xlu1 %1102 }
 0x376   : > { %v1112_v35 = vmul.f32 %v1110_v28, %v1103_v34 }
 0x378   : > { %v1114_v36 = vsub.f32 %v1095_v19, %v1112_v35 }
 0x37a   : > { %v1116_v38 = vmul.f32 %v1114_v36, %v1114_v36 }
 0x37c   : > { %v1120_v39 = vsel %vm1097_vm12, %v1116_v38, 0.0 }
 0x37d   : > { %1121 = vadd.xlane.f32.xlu2 %v1120_v39 }
 0x38d   : > { %v1261_v58 = vpop.permute.xlu1 %1260 }
 0x3e8   : > { %v1119_v40 = vpop.xlane.xlu2 %1118 }
 0x3e9   : > { %v1123_v41 = vmul.f32 %v1119_v40, %v1110_v28 }
 0x3eb   : > { %v1125_v42 = vadd.f32 1e-05, %v1123_v41 }
 0x3ed   : > { %2543 = vrsqrt.f32 %v1125_v42  ;;  %vm1133_vm15 = vweird.f32 %v1125_v42 }
 0x3f0   : > { %v1122_v43 = vpop.xlane.xlu2 %1121 }
 0x3f1   : > { %v1124_v44 = vmul.f32 %v1122_v43, %v1110_v28  ;;  %v1327_v43 = vpop.f32.mrf.mxu1 }
 0x3f3   : > { %v2544_v47 = vpop.eup %2543  ;;  %v1126_v48 = vadd.f32 1e-05, %v1124_v44  ;;  %v1256_v44 = vpop.permute.xlu0 %1255 }
 0x3f4   : > { %v1128_v50 = vmul.f32 %v2544_v47, %v1125_v42  ;;  %vm1134_vm14 = vweird.f32 %v2544_v47 }
 0x3f5   : > { %2545 = vrsqrt.f32 %v1126_v48  ;;  %vm1135_vm0 = vmor %vm1133_vm15, %vm1134_vm14  ;;  %vm1143_vm2 = vweird.f32 %v1126_v48  ;;  %vm1647_vm14 = vcmask 80896   ;;  %vm1671_vm15 = vcmask 392192  }
 0x3f6   : > { %v1129_v52 = vmul.f32 %v2544_v47, %v1128_v50 }
 0x3f8   : > { %v1130_v54 = vmul.f32 0.5, %v1129_v52 }
 0x3fa   : > { %v1131_v56 = vsub.f32 1.5, %v1130_v54 }
 0x3fb   : > { %v2546_v57 = vpop.eup %2545 }
 0x3fc   : > { %v1132_v59 = vmul.f32 %v2544_v47, %v1131_v56  ;;  %v1138_v60 = vmul.f32 %v2546_v57, %v1126_v48  ;;  %vm1144_vm1 = vweird.f32 %v2546_v57  ;;  %v1355_v56 = vpop.f32.mrf.mxu2 }
 0x3fd   : > { %vm1145_vm3 = vmor %vm1143_vm2, %vm1144_vm1  ;;  %vm1886_vm1 = vcmask 60416  }
 0x3fe   : > { %v1136_v62 = vsel %vm1135_vm0, %v2544_v47, %v1132_v59  ;;  %v1139_v63 = vmul.f32 %v2546_v57, %v1138_v60  ;;  %vm1977_vm0 = vcmask 130048  }
 0x3ff   : > { %v1147_v1 = vmul.f32 %v1136_v62, %v1113_v31 }
 0x400   : > { %v1140_v2 = vmul.f32 0.5, %v1139_v63  ;;  %v1331_v63 = vpop.f32.mrf.mxu1 }
 0x401   : > { %v1153_v3 = vmul.f32 %v2537_v61, %v1147_v1 }
 0x402   : > { %v1141_v4 = vsub.f32 1.5, %v1140_v2 }
 0x403   : > { %v3089_v5 = vadd.f32 %v2538_v0, %v1153_v3 }
 0x404   : > { %v1142_v6 = vmul.f32 %v2546_v57, %v1141_v4  ;;  %v1384_v4 = vpop.f32.mrf.mxu3 }
 0x405   : > { %v3092_v7 = vmul.f32 0.70710677, %v3089_v5 }
 0x406   : > { %v1146_v8 = vsel %vm1145_vm3, %v2546_v57, %v1142_v6 }
 0x407   : > { %v1165_v9 = vmul.f32 %v3092_v7, %v3092_v7  ;;  %v1148_v10 = vmul.f32 %v1146_v8, %v1114_v36  ;;  %v1293_v36 = vpop.f32.mrf.mxu0 }
 0x408   : > { %v1294_v49 = vadd.f32 %v1293_v36, %v1256_v44 }
 0x409   : > { %v1166_v11 = vmin.f32 %v1165_v9, 16.0  ;;  %v1154_v12 = vmul.f32 %v2537_v61, %v1148_v10 }
 0x40a   : > { %v1328_v57 = vadd.f32 %v1327_v43, %v1294_v49 }
 0x40b   : > { %v3096_v13 = vadd.f32 %v2538_v0, %v1154_v12  ;;  %v1167_v14 = vmul.f32 2.1237322e-06, %v1166_v11  ;;  %v1178_v15 = vmul.f32 3.8918573e-05, %v1166_v11 }
 0x40c   : > { %v1356_v2 = vadd.f32 %v1355_v56, %v1328_v57  ;;  %v1390_v36 = vpop.f32.mrf.mxu3 }
 0x40d   : > { %v3099_v16 = vmul.f32 0.70710677, %v3096_v13  ;;  %v1168_v17 = vadd.f32 0.00028619796, %v1167_v14  ;;  %v1179_v18 = vadd.f32 0.001143296, %v1178_v15 }
 0x40f   : > { %v1205_v19 = vmul.f32 %v3099_v16, %v3099_v16  ;;  %v1169_v20 = vmul.f32 %v1168_v17, %v1166_v11  ;;  %v1180_v21 = vmul.f32 %v1179_v18, %v1166_v11  ;;  %v1301_v53 = vpop.f32.mrf.mxu0  ;;  %v1385_v18 = vadd.f32 %v1384_v4, %v1356_v2 }
 0x410   : > { %v1302_v1 = vadd.f32 %v1301_v53, %v1261_v58  ;;  %v1162_v53 = vmul.f32 0.5, %v3096_v13 }
 0x411   : > { %v3103_v22 = vmin.f32 %v1205_v19, 16.0  ;;  %v1181_v23 = vadd.f32 0.014752088, %v1180_v21  ;;  %v1170_v24 = vadd.f32 0.0036580483, %v1169_v20  ;;  %v1360_v21 = vpop.f32.mrf.mxu2 }
 0x412   : > { %v1332_v14 = vadd.f32 %v1331_v63, %v1302_v1 }
 0x413   : > { %v1182_v25 = vmul.f32 %v1181_v23, %v1166_v11  ;;  %v1207_v26 = vmul.f32 2.1237322e-06, %v3103_v22  ;;  %v1218_v27 = vmul.f32 3.8918573e-05, %v3103_v22  ;;  %v1171_v30 = vmul.f32 %v1170_v24, %v1166_v11 }
 0x415   : > { %v1183_v28 = vadd.f32 0.112945676, %v1182_v25  ;;  %v1208_v29 = vadd.f32 0.00028619796, %v1207_v26  ;;  %v1219_v31 = vadd.f32 0.001143296, %v1218_v27 }
 0x416   : > { %v1172_v37 = vadd.f32 0.05243302, %v1171_v30 }
 0x417   : > { %v1184_v32 = vmul.f32 %v1183_v28, %v1166_v11  ;;  %v1209_v33 = vmul.f32 %v1208_v29, %v3103_v22  ;;  %v1220_v34 = vmul.f32 %v1219_v31, %v3103_v22  ;;  %v1414_v17 = vpop.f32.mrf.mxu0  ;;  %v1440_v28 = vpop.f32.mrf.mxu1  ;;  %v1361_v29 = vadd.f32 %v1360_v21, %v1332_v14 }
 0x418   : > { %v1173_v45 = vmul.f32 %v1172_v37, %v1166_v11  ;;  %v1415_v30 = vadd.f32 %v1414_v17, %v1385_v18 }
 0x419   : > { %v1185_v35 = vadd.f32 0.4994258, %v1184_v32  ;;  %v1221_v38 = vadd.f32 0.014752088, %v1220_v34  ;;  %v1210_v40 = vadd.f32 0.0036580483, %v1209_v33 }
 0x41a   : > { %v1174_v50 = vadd.f32 0.18741608, %v1173_v45 }
 0x41b   : > { %v1186_v39 = vmul.f32 %v1185_v35, %v1166_v11  ;;  %v1222_v41 = vmul.f32 %v1221_v38, %v3103_v22  ;;  %v1211_v47 = vmul.f32 %v1210_v40, %v3103_v22 }
 0x41c   : > { %v1175_v59 = vmul.f32 %v1174_v50, %v1166_v11 }
 0x41d   : > { %v1187_v42 = vadd.f32 1.0, %v1186_v39  ;;  %v1223_v46 = vadd.f32 0.112945676, %v1222_v41  ;;  %v1212_v52 = vadd.f32 0.05243302, %v1211_v47  ;;  %v1441_v39 = vadd.f32 %v1440_v28, %v1415_v30 }
 0x41e   : > { %v1176_v6 = vadd.f32 1.1283791, %v1175_v59  ;;  %v1391_v41 = vadd.f32 %v1390_v36, %v1361_v29 }
 0x41f   : > { %2547 = vrcp.f32 %v1187_v42  ;;  %v1224_v48 = vmul.f32 %v1223_v46, %v3103_v22  ;;  %v1213_v62 = vmul.f32 %v1212_v52, %v3103_v22  ;;  %v1199_v3 = vand.u32 2147483648, %v1187_v42  ;;  %v1418_v44 = vpop.f32.mrf.mxu0 }
 0x420   : > { %v1197_v9 = vand.u32 2147483647, %v1187_v42  ;;  %vm1193_vm5 = vweird.f32 %v1187_v42  ;;  %v1177_v19 = vmul.f32 %v1176_v6, %v3092_v7  ;;  %v1161_v7 = vmul.f32 0.5, %v3089_v5 }
 0x421   : > { %v1225_v51 = vadd.f32 0.4994258, %v1224_v48  ;;  %v1214_v10 = vadd.f32 0.18741608, %v1213_v62  ;;  %v1200_v11 = vor.u32 1.1754944e-38, %v1199_v3  ;;  %v1419_v49 = vadd.f32 %v1418_v44, %v1391_v41 }
 0x422   : > { %vm1198_vm7 = vcmp.eq.f32.partialorder %v1197_v9, 8.507059e+37 }
 0x423   : > { %v1226_v54 = vmul.f32 %v1225_v51, %v3103_v22  ;;  %v1215_v24 = vmul.f32 %v1214_v10, %v3103_v22  ;;  %v1444_v51 = vpop.f32.mrf.mxu1 }
 0x425   : > { %v2548_v55 = vpop.eup %2547  ;;  %v1227_v61 = vadd.f32 1.0, %v1226_v54  ;;  %v1216_v33 = vadd.f32 1.1283791, %v1215_v24 }
 0x426   : > { %v1189_v60 = vmul.f32 %v2548_v55, %v1187_v42  ;;  %vm1194_vm4 = vweird.f32 %v2548_v55 }
 0x427   : > { %2549 = vrcp.f32 %v1227_v61  ;;  %vm1195_vm6 = vmor %vm1193_vm5, %vm1194_vm4  ;;  %v1239_v32 = vand.u32 2147483648, %v1227_v61  ;;  %v1237_v35 = vand.u32 2147483647, %v1227_v61  ;;  %vm1233_vm9 = vweird.f32 %v1227_v61 }
 0x428   : > { %v1190_v0 = vsub.f32 1.0, %v1189_v60  ;;  %v1217_v42 = vmul.f32 %v1216_v33, %v3099_v16 }
 0x429   : > { %v1240_v40 = vor.u32 1.1754944e-38, %v1239_v32  ;;  %vm1238_vm13 = vcmp.eq.f32.partialorder %v1237_v35, 8.507059e+37  ;;  %v1971_v35 = vld [vmem:[%s3291_s15] sm:$0xf] }
 0x42a   : > { %v1191_v8 = vmul.f32 %v2548_v55, %v1190_v0 }
 0x42c   : > { %v1192_v12 = vadd.f32 %v2548_v55, %v1191_v8 }
 0x42d   : > { %v2550_v15 = vpop.eup %2549 }
 0x42e   : > { %v1196_v20 = vsel %vm1195_vm6, %v2548_v55, %v1192_v12  ;;  %v1229_v25 = vmul.f32 %v2550_v15, %v1227_v61  ;;  %vm1234_vm8 = vweird.f32 %v2550_v15  ;;  %v1445_v55 = vadd.f32 %v1444_v51, %v1419_v49 }
 0x42f   : > { %v1201_v23 = vsel %vm1198_vm7, %v1200_v11, %v1196_v20  ;;  %vm1235_vm10 = vmor %vm1233_vm9, %vm1234_vm8 }
 0x430   : > { %v1202_v26 = vmul.f32 %v1201_v23, %v1177_v19  ;;  %v1230_v27 = vsub.f32 1.0, %v1229_v25 }
 0x432   : > { %v2426_v31 = vclamps-f32 %v1202_v26, 1.0  ;;  %v1231_v34 = vmul.f32 %v2550_v15, %v1230_v27 }
 0x434   : > { %v1245_v37 = vadd.f32 1.0, %v2426_v31  ;;  %v1232_v38 = vadd.f32 %v2550_v15, %v1231_v34  ;;  %v1665_v34 = vld [vmem:[%s3287_s11] sm:$0xf] }
 0x436   : > { %v1247_v22 = vmul.f32 %v1245_v37, %v1161_v7  ;;  %v1236_v43 = vsel %vm1235_vm10, %v2550_v15, %v1232_v38 }
 0x437   : > { %v1241_v46 = vsel %vm1238_vm13, %v1240_v40, %v1236_v43  ;;  %v1664_v40 = vld [vmem:[%s3286_s10] sm:$0xf] }
 0x438   : > { %v1447_v45 = vadd.f32 %v1441_v39, %v1247_v22  ;;  %v1242_v47 = vmul.f32 %v1241_v46, %v1217_v42  ;;  %v1673_v41 = vsel %vm1671_vm15, %v1664_v40, 0 }
 0x439   : > { %v3146_v43 = vand.u32 4294901760, %v1673_v41 }
 0x43a   : > { %v1451_v48 = vsel %vm1097_vm12, %v1447_v45, 0  ;;  %v2427_v50 = vclamps-f32 %v1242_v47, 1.0 }
 0x43b   : > { %v1476_v5 = vand.u32 4294901760, %v1451_v48  ;;  %v3155_v47 = vsub.f32 %v1673_v41, %v3146_v43 }
 0x43c   : > { %v1246_v54 = vadd.f32 1.0, %v2427_v50 }
 0x43d   : > { %1515 = vmatmul.f32.vlgmr.msra.gmra.mxu3 %v1476_v5  ;;  %v1477_v52 = vsub.f32 %v1451_v48, %v1476_v5  ;;  %v1970_v48 = vld [vmem:[%s3290_s14] sm:$0xf] }
 0x43e   : > { %v1248_v56 = vmul.f32 %v1246_v54, %v1162_v53 }
 0x43f   : > { %1543 = vmatmul.f32.vlgmr.msrb.gmra.mxu0 %v1477_v52  ;;  %v1478_v16 = vand.u32 4294901760, %v1477_v52 }
 0x440   : > { %v1448_v58 = vadd.f32 %v1445_v55, %v1248_v56  ;;  %v1699_v55 = vand.u32 4294901760, %v3155_v47 }
 0x441   : > { %1572 = vmatmul.f32.vlgmr.msrb.gmra.mxu1 %v1478_v16  ;;  %v1479_v57 = vsub.f32 %v1477_v52, %v1478_v16  ;;  %v1979_v16 = vsel %vm1977_vm0, %v1970_v48, 0 }
 0x442   : > { %v1454_v60 = vsel %vm1097_vm12, %v1448_v58, 0  ;;  %vm1644_vm12 = vcmask 15360  }
 0x443   : > { %v1480_v59 = vand.u32 4294901760, %v1479_v57  ;;  %v1484_v61 = vand.u32 4294901760, %v1454_v60 }
 0x445   : > { %1481 = vmatmul.f32.vlgmr.msra.gmra.mxu2 %v1480_v59  ;;  %1519 = vmatmul.f32.gmra.mxu3 %v1484_v61  ;;  %v1485_v62 = vsub.f32 %v1454_v60, %v1484_v61 }
 0x447   : > { %1548 = vmatmul.f32.gmra.mxu0 %v1485_v62  ;;  %v1486_v63 = vand.u32 4294901760, %v1485_v62 }
 0x449   : > { %1578 = vmatmul.f32.gmra.mxu1 %v1486_v63  ;;  %v1487_v0 = vsub.f32 %v1485_v62, %v1486_v63  ;;  %v3186_v62 = vand.u32 4294901760, %v1979_v16 }
 0x44b   : > { %v1488_v13 = vand.u32 4294901760, %v1487_v0  ;;  %v1700_v0 = vsub.f32 %v3155_v47, %v1699_v55 }
 0x44d   : > { %1489 = vmatmul.f32.gmra.mxu2 %v1488_v13  ;;  %1628 = vmatmul.f32.vlgmr.msrb.gmra.mxu3 %v1476_v5 }
 0x455   : > { %1602 = vmatmul.f32.vlgmr.msrb.gmra.mxu2 %v1476_v5  ;;  %1632 = vmatmul.f32.gmra.mxu3 %v1484_v61 }
 0x45d   : > { %1606 = vmatmul.f32.gmra.mxu2 %v1484_v61 }
 0x4bc   : > { %v1544_v6 = vpop.f32.mrf.mxu0 }
 0x4be   : > { %v1573_v10 = vpop.f32.mrf.mxu1 }
 0x4c0   : > { %v1516_v1 = vpop.f32.mrf.mxu3 }
 0x4c4   : > { %v1549_v18 = vpop.f32.mrf.mxu0 }
 0x4c6   : > { %v1579_v21 = vpop.f32.mrf.mxu1 }
 0x4c8   : > { %v1482_v2 = vpop.f32.mrf.mxu2  ;;  %v1520_v3 = vpop.f32.mrf.mxu3 }
 0x4c9   : > { %v1517_v4 = vadd.f32 %v1516_v1, %v1482_v2 }
 0x4cb   : > { %v1545_v9 = vadd.f32 %v1544_v6, %v1517_v4 }
 0x4cd   : > { %v1574_v14 = vadd.f32 %v1573_v10, %v1545_v9  ;;  %v3201_v9 = vsub.f32 %v1979_v16, %v3186_v62 }
 0x4d0   : > { %v1490_v8 = vpop.f32.mrf.mxu2  ;;  %v1629_v11 = vpop.f32.mrf.mxu3 }
 0x4d1   : > { %v1521_v12 = vadd.f32 %v1520_v3, %v1490_v8 }
 0x4d3   : > { %v1550_v19 = vadd.f32 %v1549_v18, %v1521_v12  ;;  %v1701_v12 = vand.u32 4294901760, %v1700_v0 }
 0x4d5   : > { %v1580_v23 = vadd.f32 %v1579_v21, %v1550_v19 }
 0x4d8   : > { %v1603_v15 = vpop.f32.mrf.mxu2  ;;  %v1633_v26 = vpop.f32.mrf.mxu3 }
 0x4d9   : > { %v1604_v17 = vadd.f32 %v1603_v15, %v1574_v14 }
 0x4db   : > { %v1630_v20 = vadd.f32 %v1629_v11, %v1604_v17 }
 0x4dd   : > { %1638 = vrot.lane.b32.xlu1 %v1630_v20, %s2799_s12  ;;  %v3150_v45 = vand.u32 4294901760, %v1630_v20 }
 0x4df   : > { %v3164_v5 = vsub.f32 %v1630_v20, %v3150_v45  ;;  %v2001_v20 = vand.u32 4294901760, %v3201_v9 }
 0x4e0   : > { %v1607_v24 = vpop.f32.mrf.mxu2 }
 0x4e1   : > { %v1608_v25 = vadd.f32 %v1607_v24, %v1580_v23  ;;  %v2030_v13 = vand.u32 4294901760, %v3164_v5 }
 0x4e3   : > { %v1634_v27 = vadd.f32 %v1633_v26, %v1608_v25  ;;  %v2031_v14 = vsub.f32 %v3164_v5, %v2030_v13  ;;  %v2002_v26 = vsub.f32 %v3201_v9, %v2001_v20 }
 0x4e5   : > { %1640 = vrot.lane.b32.xlu2 %v1634_v27, %s2799_s12  ;;  %v3148_v44 = vand.u32 4294901760, %v1634_v27  ;;  %v2032_v21 = vand.u32 4294901760, %v2031_v14  ;;  %s2430_s12 = sshll.u32 %s2915_s30, 2  ;;  %s2294_s30 = scalar_lea.sflag [#allocation4], %s3009_s21 }
 0x4e6   : > { %s2304_s6 = scalar_lea.hbm %s3326_s0, %s2430_s12 }
 0x4e7   : > { %v3161_v49 = vsub.f32 %v1634_v27, %v3148_v44  ;;  %s2308_s13 = sshll.u32 %s2304_s6, 4  ;;  %s2309_s13 = int_to_ptr.hbm [resolvable:$true] %s2308_s13 }
 0x4e8   : > { %s2721_s26 = sshra.s32 %s2309_s13, 4  ;;  %s2722_s26 = int_to_ptr.hbm [resolvable:$true] %s2721_s26 }
 0x4e9   : > { %v2024_v59 = vand.u32 4294901760, %v3161_v49  ;;  %s2723_s22 = scalar_lea.hbm %s2722_s26, 4  ;;  %p2728_p12 = scmp.lt.s32.totalorder %s2722_s26, %s3326_s0 }
 0x4ea   : > { %p2724_p1 = scmp.ne.s32.totalorder %s2722_s26, %s2723_s22 }
 0x4eb   : > { %v2025_v4 = vsub.f32 %v3161_v49, %v2024_v59 }
 0x4ec   : > { %p2725_p3 = pnand %p2724_p1, %p2978_p5 }
 0x4ed   : > { %v2026_v15 = vand.u32 4294901760, %v2025_v4  ;;  %v2540_v4 = vld [vmem:[#allocation10] ss:$0 sm:$0xff] }
 0x4ee   : > { %p2726_p4 = pneg %p2725_p3 }
 0x53f   : > { %v1641_v28 = vpop.permute.xlu2 %1640 }
 0x540   : > { %v1646_v29 = vsel %vm1644_vm12, 0.0, %v1641_v28 }
 0x541   : > { %v1649_v30 = vsel %vm1647_vm14, %v1646_v29, 0.0  ;;  %v2003_v29 = vand.u32 4294901760, %v2002_v26 }
 0x542   : > { %1660 = vrot.lane.b32.xlu2 %v1649_v30, %s2789_s24  ;;  %v3174_v56 = vand.u32 4294901760, %v1649_v30 }
 0x544   : > { %v1741_v1 = vsub.f32 %v1649_v30, %v3174_v56 }
 0x546   : > { %v1742_v11 = vand.u32 4294901760, %v1741_v1 }
 0x548   : > { %v1743_v23 = vsub.f32 %v1741_v1, %v1742_v11 }
 0x54a   : > { %1654 = vrot.lane.b32.xlu2 %v1649_v30, %s2796_s29  ;;  %v1744_v27 = vand.u32 4294901760, %v1743_v23 }
 0x54f   : > { %v1639_v31 = vpop.permute.xlu1 %1638 }
 0x550   : > { %v1645_v32 = vsel %vm1644_vm12, 0.0, %v1639_v31 }
 0x551   : > { %v1648_v33 = vsel %vm1647_vm14, %v1645_v32, 0.0 }
 0x552   : > { %1652 = vrot.lane.b32.xlu0 %v1648_v33, %s2796_s29  ;;  %1658 = vrot.lane.b32.xlu1 %v1648_v33, %s2789_s24  ;;  %v3183_v60 = vand.u32 4294901760, %v1648_v33  ;;  %s619_s24 = scalar_lea.vmem [#allocation11], %s2425_s23  ;;  %s2727_s23 = scalar_lea.hbm %s3326_s0, 8 }
 0x553   : > { %s2306_s29 = sshll.u32 %s619_s24, 4  ;;  %p2729_p7 = scmp.lt.s32.totalorder %s2727_s23, %s2723_s22  ;;  %s2307_s29 = int_to_ptr.vmem [resolvable:$true] %s2306_s29 }
 0x554   : > { %v1747_v8 = vsub.f32 %v1648_v33, %v3183_v60 }
 0x555   : > { %p2730_p8 = por %p2729_p7, %p2728_p12 }
 0x556   : > { %v1748_v19 = vand.u32 4294901760, %v1747_v8 }
 0x557   : > { %p2731_p9 = pnand %p2730_p8, %p2726_p4 }
 0x558   : > { %v1749_v25 = vsub.f32 %v1747_v8, %v1748_v19 }
 0x55a   : > { %1668 = vperm.xlu1 %2534, %v1665_v34   ;;  %v1750_v28 = vand.u32 4294901760, %v1749_v25 }
 0x562   : > { %1974 = vperm.xlu1 %2534, %v1971_v35  }
 0x59c   : > { %v1661_v36 = vpop.permute.xlu2 %1660 }
 0x59d   : > { %v3131_v7 = vand.u32 4294901760, %v1661_v36 }
 0x59f   : > { %v3134_v37 = vsub.f32 %v1661_v36, %v3131_v7  ;;  %1686 = vmatpush.msra.mxu0 %v3131_v7  ;;  %1802 = vmatpush.msra.mxu3 %v3131_v7 }
 0x5a1   : > { %v1718_v38 = vand.u32 4294901760, %v3134_v37  ;;  %1769 = vmatpush.msra.mxu2 %v3134_v37 }
 0x5a3   : > { %v1719_v39 = vsub.f32 %v3134_v37, %v1718_v38 }
 0x5a4   : > { %v1655_v42 = vpop.permute.xlu2 %1654 }
 0x5a5   : > { %v1720_v22 = vand.u32 4294901760, %v1719_v39  ;;  %v3152_v46 = vand.u32 4294901760, %v1655_v42 }
 0x5a7   : > { %1721 = vmatpush.msra.mxu1 %v1720_v22  ;;  %v3167_v50 = vsub.f32 %v1655_v42, %v3152_v46  ;;  %v2800_v42 = vmov 8.0  }
 0x5a8   : > { %2551 = vrcp.f32 %v2800_v42 }
 0x5a9   : > { %v1730_v61 = vand.u32 4294901760, %v3167_v50 }
 0x5ab   : > { %v1731_v6 = vsub.f32 %v3167_v50, %v1730_v61 }
 0x5ad   : > { %v1732_v18 = vand.u32 4294901760, %v1731_v6 }
 0x5c4   : > { %v1653_v51 = vpop.permute.xlu0 %1652  ;;  %v1659_v52 = vpop.permute.xlu1 %1658 }
 0x5c5   : > { %v3169_v53 = vand.u32 4294901760, %v1653_v51  ;;  %v3171_v54 = vand.u32 4294901760, %v1659_v52 }
 0x5c7   : > { %v3177_v57 = vsub.f32 %v1653_v51, %v3169_v53  ;;  %v1723_v58 = vsub.f32 %v1659_v52, %v3171_v54  ;;  %1688 = vmatpush.msra.mxu0 %v3171_v54  ;;  %1804 = vmatpush.msra.mxu3 %v3171_v54 }
 0x5c9   : > { %v1724_v63 = vand.u32 4294901760, %v1723_v58  ;;  %1690 = vmatpush.msra.mxu0 %v3152_v46  ;;  %1772 = vmatpush.msra.mxu2 %v1723_v58  ;;  %v1736_v2 = vand.u32 4294901760, %v3177_v57 }
 0x5ca   : > { %1806 = vmatpush.msra.mxu3 %v3152_v46 }
 0x5cb   : > { %1692 = vmatpush.msra.mxu0 %v3169_v53  ;;  %1775 = vmatpush.msra.mxu2 %v3167_v50  ;;  %v1725_v3 = vsub.f32 %v1723_v58, %v1724_v63  ;;  %v1737_v17 = vsub.f32 %v3177_v57, %v1736_v2 }
 0x5cc   : > { %1808 = vmatpush.msra.mxu3 %v3169_v53  ;;  %v1669_v31 = vpop.permute.xlu1 %1668 }
 0x5cd   : > { %1694 = vmatpush.msra.mxu0 %v3174_v56  ;;  %1778 = vmatpush.msra.mxu2 %v3177_v57  ;;  %v1726_v10 = vand.u32 4294901760, %v1725_v3  ;;  %v1738_v24 = vand.u32 4294901760, %v1737_v17 }
 0x5ce   : > { %1810 = vmatpush.msra.mxu3 %v3174_v56 }
 0x5cf   : > { %1696 = vmatpush.msra.mxu0 %v3183_v60  ;;  %1727 = vmatpush.msra.mxu1 %v1726_v10 }
 0x5d0   : > { %1781 = vmatpush.msra.mxu2 %v1741_v1  ;;  %1812 = vmatpush.msra.mxu3 %v3183_v60 }
 0x5d1   : > { %1702 = vmatmul.f32.vlgmr.msra.gmra.mxu0 %v1701_v12  ;;  %1733 = vmatpush.msra.mxu1 %v1732_v18 }
 0x5d2   : > { %2027 = vmatpush.msrb.mxu3 %v2026_v15  ;;  %1833 = vmatpush.msrb.mxu0 %v1718_v38 }
 0x5d3   : > { %1784 = vmatpush.msra.mxu2 %v1747_v8  ;;  %1739 = vmatpush.msra.mxu1 %v1738_v24 }
 0x5d4   : > { %2033 = vmatpush.msrb.mxu3 %v2032_v21  ;;  %1787 = vmatmul.f32.vlgmr.msra.gmra.mxu2 %v3155_v47 }
 0x5d5   : > { %1837 = vmatpush.msrb.mxu0 %v1724_v63  ;;  %1996 = vmatpush.msrb.mxu2 %v3148_v44 }
 0x5d6   : > { %1816 = vmatmul.f32.vlgmr.msra.gmra.mxu3 %v1699_v55  ;;  %1745 = vmatpush.msra.mxu1 %v1744_v27  ;;  %v2141_v55 = vld [vmem:[%s3292_s16] sm:$0xff] }
 0x5d7   : > { %1841 = vmatpush.msrb.mxu0 %v1730_v61  ;;  %2132 = vmatpush.msra.mxu3 %v3148_v44  ;;  %v2160_v16 = vand.u32 4294901760, %v2141_v55 }
 0x5d8   : > { %1998 = vmatpush.msrb.mxu2 %v3150_v45  ;;  %1751 = vmatpush.msra.mxu1 %v1750_v28 }
 0x5d9   : > { %2134 = vmatpush.msra.mxu3 %v3150_v45  ;;  %1845 = vmatpush.msrb.mxu0 %v1736_v2  ;;  %v2187_v57 = vsub.f32 %v2141_v55, %v2160_v16  ;;  %v2539_v2 = vld [vmem:[#allocation8] ss:$0 sm:$0xff] }
 0x5da   : > { %2107 = vmatpush.msra.mxu2 %v2024_v59  ;;  %1753 = vmatmul.f32.vlgmr.msra.gmra.mxu1 %v3146_v43 }
 0x5db   : > { %1849 = vmatpush.msrb.mxu0 %v1742_v11  ;;  %1870 = vmatpush.msrb.mxu1 %v3131_v7  ;;  %v2188_v58 = vand.u32 4294901760, %v2187_v57 }
 0x5dc   : > { %2111 = vmatpush.msra.mxu2 %v2030_v13 }
 0x5dd   : > { %2004 = vmatmul.f32.vlgmr.msrb.gmra.mxu2 %v2003_v29  ;;  %1853 = vmatpush.msrb.mxu0 %v1748_v19  ;;  %v2189_v59 = vsub.f32 %v2187_v57, %v2188_v58 }
 0x5de   : > { %1872 = vmatpush.msrb.mxu1 %v3171_v54  ;;  %1855 = vmatmul.f32.vlgmr.msrb.gmra.mxu0 %v3146_v43 }
 0x5df   : > { %2055 = vmatpush.msra.mxu0 %v3161_v49  ;;  %2035 = vmatmul.f32.vlgmr.msrb.gmra.mxu3 %v3186_v62 }
 0x5e0   : > { %1874 = vmatpush.msrb.mxu1 %v3152_v46  ;;  %2237 = vmatpush.msrb.mxu3 %v2160_v16 }
 0x5e1   : > { %2058 = vmatpush.msra.mxu0 %v3164_v5  ;;  %2214 = vmatpush.msrb.mxu2 %v2187_v57 }
 0x5e2   : > { %1876 = vmatpush.msrb.mxu1 %v3169_v53 }
 0x5e3   : > { %2161 = vmatpush.msrb.mxu0 %v2160_v16 }
 0x5e4   : > { %1878 = vmatpush.msrb.mxu1 %v3174_v56 }
 0x5e5   : > { %2113 = vmatmul.f32.vlgmr.msra.gmra.mxu2 %v3186_v62 }
 0x5e6   : > { %1880 = vmatpush.msrb.mxu1 %v3183_v60  ;;  %2061 = vmatmul.f32.vlgmr.msra.gmra.mxu0 %v3201_v9  ;;  %v2190_v60 = vand.u32 4294901760, %v2189_v59 }
 0x5e7   : > { %1882 = vmatmul.f32.vlgmr.msrb.gmra.mxu1 %v3146_v43  ;;  %2136 = vmatmul.f32.vlgmr.msra.gmra.mxu3 %v3186_v62  ;;  %v2552_v43 = vpop.eup %2551 }
 0x5e8   : > { %2080 = vmatpush.msra.mxu1 %v3148_v44  ;;  %v1891_v44 = vmul.f32 8.0, %v2552_v43  ;;  %vm1895_vm2 = vweird.f32 %v2552_v43  ;;  %2263 = vmatpush.msra.mxu0 %v2188_v58 }
 0x5ea   : > { %2082 = vmatpush.msra.mxu1 %v3150_v45  ;;  %v1892_v45 = vsub.f32 1.0, %v1891_v44 }
 0x5ec   : > { %v1893_v46 = vmul.f32 %v2552_v43, %v1892_v45  ;;  %2191 = vmatpush.msrb.mxu1 %v2190_v60 }
 0x5ee   : > { %v1894_v47 = vadd.f32 %v2552_v43, %v1893_v46 }
 0x5ef   : > { %2086 = vmatmul.f32.vlgmr.msra.gmra.mxu1 %v2001_v20 }
 0x5f0   : > { %v1896_v48 = vsel %vm1895_vm2, %v2552_v43, %v1894_v47  ;;  %2285 = vmatpush.msra.mxu1 %v2160_v16 }
 0x64e   : > { %v1703_v30 = vpop.f32.mrf.mxu0 }
 0x64f   : > { %v1704_v32 = vadd.f32 %v1703_v30, %v1669_v31 }
 0x657   : > { %v1754_v33 = vpop.f32.mrf.mxu1  ;;  %v1788_v35 = vpop.f32.mrf.mxu2 }
 0x658   : > { %v1755_v34 = vadd.f32 %v1754_v33, %v1704_v32 }
 0x659   : > { %v1817_v7 = vpop.f32.mrf.mxu3 }
 0x65a   : > { %v1789_v36 = vadd.f32 %v1788_v35, %v1755_v34  ;;  %v1975_v35 = vpop.permute.xlu1 %1974 }
 0x65b   : > { %v1856_v38 = vpop.f32.mrf.mxu0 }
 0x65c   : > { %v1818_v37 = vadd.f32 %v1817_v7, %v1789_v36 }
 0x65e   : > { %v1857_v39 = vadd.f32 %v1856_v38, %v1818_v37 }
 0x660   : > { %v2005_v33 = vpop.f32.mrf.mxu2 }
 0x661   : > { %v2006_v36 = vadd.f32 %v2005_v33, %v1975_v35 }
 0x662   : > { %v2036_v37 = vpop.f32.mrf.mxu3 }
 0x664   : > { %v1883_v22 = vpop.f32.mrf.mxu1 }
 0x665   : > { %v1884_v40 = vadd.f32 %v1883_v22, %v1857_v39  ;;  %v2037_v22 = vadd.f32 %v2036_v37, %v2006_v36 }
 0x667   : > { %v1887_v41 = vsel %vm1886_vm1, %v1884_v40, 0.0 }
 0x668   : > { %1888 = vadd.xlane.f32.xlu2 %v1887_v41  ;;  %v2062_v41 = vpop.f32.mrf.mxu0 }
 0x669   : > { %v2063_v47 = vadd.f32 %v2062_v41, %v2037_v22 }
 0x66c   : > { %v2087_v46 = vpop.f32.mrf.mxu1 }
 0x6db   : > { %v1889_v49 = vpop.xlane.xlu2 %1888 }
 0x6dc   : > { %v1897_v5 = vmul.f32 %v1896_v48, %v1889_v49 }
 0x6de   : > { %v1898_v50 = vsub.f32 %v1884_v40, %v1897_v5  ;;  %v2088_v5 = vadd.f32 %v2087_v46, %v2063_v47 }
 0x6e0   : > { %v1899_v51 = vmul.f32 %v1898_v50, %v1898_v50 }
 0x6e2   : > { %v1900_v52 = vsel %vm1886_vm1, %v1899_v51, 0.0 }
 0x6e3   : > { %1901 = vadd.xlane.f32.xlu0 %v1900_v52  ;;  %v2114_v52 = vpop.f32.mrf.mxu2 }
 0x6e4   : > { %v2115_v55 = vadd.f32 %v2114_v52, %v2088_v5 }
 0x756   : > { %v1902_v53 = vpop.xlane.xlu0 %1901 }
 0x757   : > { %v1903_v54 = vmul.f32 %v1902_v53, %v1896_v48 }
 0x759   : > { %v1904_v56 = vadd.f32 1e-05, %v1903_v54 }
 0x75b   : > { %2553 = vrsqrt.f32 %v1904_v56  ;;  %vm1911_vm4 = vweird.f32 %v1904_v56 }
 0x761   : > { %v2554_v61 = vpop.eup %2553 }
 0x762   : > { %v1906_v62 = vmul.f32 %v2554_v61, %v1904_v56  ;;  %vm1912_vm3 = vweird.f32 %v2554_v61  ;;  %v2137_v56 = vpop.f32.mrf.mxu3 }
 0x763   : > { %vm1913_vm5 = vmor %vm1911_vm4, %vm1912_vm3  ;;  %v2138_v59 = vadd.f32 %v2137_v56, %v2115_v55 }
 0x764   : > { %v1907_v63 = vmul.f32 %v2554_v61, %v1906_v62 }
 0x766   : > { %v1908_v0 = vmul.f32 0.5, %v1907_v63 }
 0x768   : > { %v1909_v13 = vsub.f32 1.5, %v1908_v0 }
 0x76a   : > { %v1910_v1 = vmul.f32 %v2554_v61, %v1909_v13 }
 0x76c   : > { %v1914_v3 = vsel %vm1913_vm5, %v2554_v61, %v1910_v1 }
 0x76d   : > { %v1915_v6 = vmul.f32 %v1914_v3, %v1898_v50 }
 0x76f   : > { %v1920_v8 = vmul.f32 %v2539_v2, %v1915_v6 }
 0x771   : > { %v1925_v9 = vadd.f32 %v2540_v4, %v1920_v8 }
 0x773   : > { %v1927_v10 = vmul.f32 0.70710677, %v1925_v9  ;;  %v1926_v57 = vmul.f32 0.5, %v1925_v9 }
 0x775   : > { %v1928_v12 = vmul.f32 %v1927_v10, %v1927_v10 }
 0x777   : > { %v1929_v14 = vmin.f32 %v1928_v12, 16.0 }
 0x779   : > { %v1930_v11 = vmul.f32 2.1237322e-06, %v1929_v14  ;;  %v1941_v15 = vmul.f32 3.8918573e-05, %v1929_v14 }
 0x77b   : > { %v1931_v17 = vadd.f32 0.00028619796, %v1930_v11  ;;  %v1942_v18 = vadd.f32 0.001143296, %v1941_v15 }
 0x77d   : > { %v1932_v19 = vmul.f32 %v1931_v17, %v1929_v14  ;;  %v1943_v20 = vmul.f32 %v1942_v18, %v1929_v14 }
 0x77f   : > { %v1944_v21 = vadd.f32 0.014752088, %v1943_v20  ;;  %v1933_v23 = vadd.f32 0.0036580483, %v1932_v19 }
 0x781   : > { %v1945_v24 = vmul.f32 %v1944_v21, %v1929_v14  ;;  %v1934_v26 = vmul.f32 %v1933_v23, %v1929_v14 }
 0x783   : > { %v1946_v25 = vadd.f32 0.112945676, %v1945_v24  ;;  %v1935_v29 = vadd.f32 0.05243302, %v1934_v26 }
 0x785   : > { %v1947_v27 = vmul.f32 %v1946_v25, %v1929_v14  ;;  %v1936_v32 = vmul.f32 %v1935_v29, %v1929_v14 }
 0x787   : > { %v1948_v28 = vadd.f32 0.4994258, %v1947_v27  ;;  %v1937_v34 = vadd.f32 0.18741608, %v1936_v32 }
 0x789   : > { %v1949_v30 = vmul.f32 %v1948_v28, %v1929_v14  ;;  %v1938_v38 = vmul.f32 %v1937_v34, %v1929_v14 }
 0x78b   : > { %v1950_v31 = vadd.f32 1.0, %v1949_v30  ;;  %v1939_v43 = vadd.f32 1.1283791, %v1938_v38 }
 0x78d   : > { %2555 = vrcp.f32 %v1950_v31  ;;  %v1962_v42 = vand.u32 2147483648, %v1950_v31  ;;  %v1960_v45 = vand.u32 2147483647, %v1950_v31  ;;  %vm1956_vm7 = vweird.f32 %v1950_v31 }
 0x78e   : > { %v1940_v50 = vmul.f32 %v1939_v43, %v1927_v10 }
 0x78f   : > { %v1963_v49 = vor.u32 1.1754944e-38, %v1962_v42  ;;  %vm1961_vm9 = vcmp.eq.f32.partialorder %v1960_v45, 8.507059e+37 }
 0x793   : > { %v2556_v7 = vpop.eup %2555 }
 0x794   : > { %v1952_v39 = vmul.f32 %v2556_v7, %v1950_v31  ;;  %vm1957_vm6 = vweird.f32 %v2556_v7 }
 0x795   : > { %vm1958_vm8 = vmor %vm1956_vm7, %vm1957_vm6 }
 0x796   : > { %v1953_v40 = vsub.f32 1.0, %v1952_v39 }
 0x798   : > { %v1954_v44 = vmul.f32 %v2556_v7, %v1953_v40 }
 0x79a   : > { %v1955_v48 = vadd.f32 %v2556_v7, %v1954_v44 }
 0x79c   : > { %v1959_v51 = vsel %vm1958_vm8, %v2556_v7, %v1955_v48 }
 0x79d   : > { %v1964_v53 = vsel %vm1961_vm9, %v1963_v49, %v1959_v51 }
 0x79e   : > { %v1965_v54 = vmul.f32 %v1964_v53, %v1940_v50 }
 0x7a0   : > { %v2428_v16 = vclamps-f32 %v1965_v54, 1.0 }
 0x7a2   : > { %v1968_v58 = vadd.f32 1.0, %v2428_v16 }
 0x7a4   : > { %v1969_v60 = vmul.f32 %v1968_v58, %v1926_v57 }
 0x7a6   : > { %v2140_v61 = vadd.f32 %v2138_v59, %v1969_v60 }
 0x7a8   : > { %v2143_v62 = vsel %vm1263_vm11, %v2140_v61, 0  ;;  %vm2291_vm11 = vcmask 125952  }
 0x7a9   : > { %v2162_v63 = vand.u32 4294901760, %v2143_v62 }
 0x7ab   : > { %2193 = vmatmul.f32.vlgmr.msrb.gmra.mxu1 %v2162_v63  ;;  %v2163_v0 = vsub.f32 %v2143_v62, %v2162_v63 }
 0x7ad   : > { %2217 = vmatmul.f32.vlgmr.msrb.gmra.mxu2 %v2163_v0  ;;  %v2164_v13 = vand.u32 4294901760, %v2163_v0 }
 0x7af   : > { %2241 = vmatmul.f32.vlgmr.msrb.gmra.mxu3 %v2164_v13  ;;  %v2165_v1 = vsub.f32 %v2163_v0, %v2164_v13 }
 0x7b1   : > { %v2166_v2 = vand.u32 4294901760, %v2165_v1 }
 0x7b3   : > { %2167 = vmatmul.f32.vlgmr.msrb.gmra.mxu0 %v2166_v2  ;;  %2287 = vmatmul.f32.vlgmr.msra.gmra.mxu1 %v2162_v63 }
 0x7bb   : > { %2265 = vmatmul.f32.vlgmr.msra.gmra.mxu0 %v2162_v63 }
 0x828   : > { %v2194_v3 = vpop.f32.mrf.mxu1 }
 0x830   : > { %v2168_v4 = vpop.f32.mrf.mxu0  ;;  %v2218_v8 = vpop.f32.mrf.mxu2 }
 0x831   : > { %v2195_v6 = vadd.f32 %v2194_v3, %v2168_v4  ;;  %v2288_v15 = vpop.f32.mrf.mxu1 }
 0x832   : > { %v2242_v10 = vpop.f32.mrf.mxu3 }
 0x833   : > { %v2219_v9 = vadd.f32 %v2218_v8, %v2195_v6 }
 0x835   : > { %v2243_v12 = vadd.f32 %v2242_v10, %v2219_v9 }
 0x838   : > { %v2266_v14 = vpop.f32.mrf.mxu0 }
 0x839   : > { %v2267_v11 = vadd.f32 %v2266_v14, %v2243_v12 }
 0x83b   : > { %v2289_v17 = vadd.f32 %v2288_v15, %v2267_v11 }
 0x83d   : > { %2292 = vst.msk [vmem:[%s619_s24] sm:$0xf] %vm2291_vm11, %v2289_v17 }
 0x83e   : > { %2734 = shalt.err (!%p2731_p9)
}
 0x83f   : > { %2451 = dma.vmem_to_hbm [thread:$0]  (%p2978_p5), %s2307_s29, 64, %s2309_s13, %s2294_s30  }
 0x840 PF: > { %s3327_s21 = sld [smem:[#allocation16_spill]]  ;;  %p3328_p10 = scmp.ge.s32.totalorder %s2781_s27, 2 }
 0x842   : > { %p2471_p13 = pnand %p3328_p10, %p2982_p6 }
 0x844   : > { %p2472_p11 = pneg %p2471_p13 }
 0x846   : > { %s2320_s6 = sand.u32 1, %s3327_s21  }
 0x847   : > { %s2321_s24 = scalar_lea.sflag [#allocation4], %s2320_s6 }
 0x848   : > { %2764 = dma.done.wait (%p2472_p11), %s2321_s24, 64  }
 0x849   : > { %2766 = vsyncadd (%p2472_p11), %s2321_s24, 4294967232  ;;  %s3329_s27 = sld [smem:[#allocation18_spill]]  ;;  %s3332_s24 = smov %s2773_s25 }
 0x84a   : > { %s3330_s26 = sld [smem:[#allocation17_spill]] }
 0x84b   : > { %s3331_s22 = sld [smem:[#allocation19_spill]] }
 0x84f   : > { %p32_p0 = scmp.ge.s32.totalorder %s3329_s27, 4  }
 0x850   : > { %s3333_s25 = smov %s3330_s26 }
 0x851   : > { %s3334_s26 = smov %s3331_s22  ;;  %34 = sbr.rel (!%p32_p0) target bundleno = 15 (0xf), region = 149 }
 0x856   :  { %2327 = vsyncpa [#allocation3], 1 }
 0x857   :  { %2329 = vsyncpa [#allocation3 + $0x1], 1 }
 0x858   :  { %2330 = vsyncpa [#allocation6], 1 }
 0x859   :  { %2331 = vsyncpa [#allocation9], 1 }
 0x85a   :  { %2332 = vsyncpa [#allocation4], 1 }
 0x85b   :  { %2334 = vsyncpa [#allocation4 + $0x1], 1 }

</bundles_post_ra>
